<compile_context>
chip_gen: v6e
topology: v6e:2x2x1
jax: 0.10.0
libtpu: 0.0.40
codegen_flags: <defaults>
</compile_context>

<pallas_src>
import functools

import jax
import jax.numpy as jnp
from jax import lax
from jax.experimental import pallas as pl
from jax.experimental.pallas import tpu as pltpu


# ----------------------------------------------------------------------------
# Fused forward kernel
# ----------------------------------------------------------------------------
def _att_dna_kernel(x_ref, wih0_ref, whh0_ref, b0_ref,
                    wih1_ref, whh1_ref, b1_ref,
                    ctx_ref, wlin_ref, blin_ref,
                    pred_ref, alpha_ref,
                    cat_ref, *, T, B, H):
    R = 2 * H          # bidirectional representation width
    G = 8 * H          # fused gate width (4 gates x 2 directions)

    # Hoisted: which fused-gate columns belong to the forward direction.
    lane = lax.broadcasted_iota(jnp.int32, (1, G), 1)
    is_fwd_col = (lane % R) < H        # layout [i_f,i_b,f_f,f_b,g_f,g_b,o_f,o_b]

    def bilstm(x_flat, wih_ref_, whh_ref_, b_ref_):
        # x_flat: (T*B, In) value, time-major rows k = t*B + b.
        # Precompute the input projection for every timestep in one matmul.
        xproj = (jnp.dot(x_flat, wih_ref_[...],
                         preferred_element_type=jnp.float32)
                 + b_ref_[...])                               # (T*B, 8H)
        whh = whh_ref_[...]                                   # (2H, 8H) hoisted

        h_cat = jnp.zeros((B, R), jnp.float32)                # [h_fwd | h_bwd]
        c_cat = jnp.zeros((B, R), jnp.float32)
        hf = [None] * T
        hb = [None] * T
        for s in range(T):                                    # static unroll (T small)
            tf, tb = s, T - 1 - s
            x_f = xproj[tf * B:(tf + 1) * B, :]               # (B, 8H) fwd time tf
            x_b = xproj[tb * B:(tb + 1) * B, :]               # (B, 8H) bwd time tb
            gates = (jnp.where(is_fwd_col, x_f, x_b)
                     + jnp.dot(h_cat, whh,
                               preferred_element_type=jnp.float32))   # (B, 8H)
            sig = jax.nn.sigmoid(gates)                       # one full-width EUP pass
            i_g = sig[:, 0 * R:1 * R]                         # [i_f | i_b]
            f_g = sig[:, 1 * R:2 * R]
            g_g = jnp.tanh(gates[:, 2 * R:3 * R])
            o_g = sig[:, 3 * R:4 * R]
            c_cat = f_g * c_cat + i_g * g_g
            h_cat = o_g * jnp.tanh(c_cat)
            hf[tf] = h_cat[:, 0:H]
            hb[tb] = h_cat[:, H:R]
        y_steps = [jnp.concatenate([hf[t], hb[t]], axis=1) for t in range(T)]
        return y_steps, h_cat                                 # per-time (B,R); final states

    # --- 2-layer bidirectional LSTM --------------------------------------
    y0_steps, hcat0 = bilstm(x_ref[...], wih0_ref, whh0_ref, b0_ref)
    y0_flat = jnp.concatenate(y0_steps, axis=0)               # (T*B, R) time-major
    y1_steps, hcat1 = bilstm(y0_flat, wih1_ref, whh1_ref, b1_ref)

    # --- rec_attention: softmax over the *batch* axis (original quirk) ----
    y1 = jnp.stack(y1_steps, axis=0)                          # (T, B, R)
    scores = jnp.sum(y1 * ctx_ref[...], axis=2)               # (T, B)
    m = jnp.max(scores, axis=1, keepdims=True)
    e = jnp.exp(scores - m)
    alpha = e / jnp.sum(e, axis=1, keepdims=True)             # (T, B)
    alpha_ref[...] = alpha

    # torch-quirk raw row-major views:
    #   alpha (T,B) -> (B,1,T), lstm_out (T,B,R) -> (B,T,R); then bmm.
    # Reproduced with a static gather over flat index k = b*T + t'.
    rep_rows = []
    for b in range(B):
        acc = jnp.zeros((1, R), jnp.float32)
        for tp in range(T):
            k = b * T + tp
            t_idx, b_idx = k // B, k % B
            a_s = alpha[t_idx:t_idx + 1, b_idx:b_idx + 1]                 # (1,1)
            acc = acc + a_s * y1_steps[t_idx][b_idx:b_idx + 1, :]         # (1,R)
        rep_rows.append(acc)
    repres = jnp.concatenate(rep_rows, axis=0)                # (B, R)

    # --- hidden[0].reshape(-1, 4H) quirk + concat + linear head -----------
    # h_n order: [layer0_fwd, layer0_bwd, layer1_fwd, layer1_bwd]
    h_fin = [hcat0[:, 0:H], hcat0[:, H:R], hcat1[:, 0:H], hcat1[:, H:R]]
    for b in range(B):
        for j in range(4):
            idx = 4 * b + j
            ld, bb = idx // B, idx % B
            cat_ref[b:b + 1, j * H:(j + 1) * H] = h_fin[ld][bb:bb + 1, :]
    cat_ref[:, 4 * H:6 * H] = repres                          # torch.cat(..., dim=1)

    logits = (jnp.dot(cat_ref[...], wlin_ref[...],
                      preferred_element_type=jnp.float32)
              + blin_ref[...])
    pred_ref[...] = jax.nn.sigmoid(logits)


# ----------------------------------------------------------------------------
# Wrapper: one pallas_call, everything resident in VMEM (tiny footprint).
# ----------------------------------------------------------------------------
def att_dna_forward(packed, iput):
    B, T, _ = iput.shape
    H = packed['hidden_size']
    out_dim = packed['w_lin_t'].shape[1]

    # time-major flat input, rows k = t*B + b
    x_flat = jnp.transpose(iput, (1, 0, 2)).astype(jnp.float32).reshape(T * B, -1)

    kernel = functools.partial(_att_dna_kernel, T=T, B=B, H=H)
    vmem = pl.BlockSpec(memory_space=pltpu.MemorySpace.VMEM)

    pred, alpha = pl.pallas_call(
        kernel,
        out_shape=(jax.ShapeDtypeStruct((B, out_dim), jnp.float32),
                   jax.ShapeDtypeStruct((T, B), jnp.float32)),
        in_specs=[vmem] * 10,
        out_specs=(vmem, vmem),
        scratch_shapes=[pltpu.VMEM((B, 6 * H), jnp.float32)],
    )(x_flat,
      packed['wih0'], packed['whh0'], packed['b0'],
      packed['wih1'], packed['whh1'], packed['b1'],
      packed['ctx'], packed['w_lin_t'], packed['b_lin'])
    return pred, alpha


# ----------------------------------------------------------------------------
# Parameter init (PyTorch-like shapes) and packing into the fused layout
# ----------------------------------------------------------------------------
def init_params(key, n_nts, hidden_size, out_dim):
    H = hidden_size
    R = 2 * H
    k_rnn = 1.0 / (H ** 0.5)
    k_lin = 1.0 / ((3 * R) ** 0.5)
    keys = iter(jax.random.split(key, 24))

    def uni(shape, k):
        return jax.random.uniform(next(keys), shape, jnp.float32, minval=-k, maxval=k)

    def lstm_dir(in_size):
        wih_t = uni((in_size, 4 * H), k_rnn)                  # W_ih^T, cols [i|f|g|o]
        whh_t = uni((H, 4 * H), k_rnn)                        # W_hh^T
        b = uni((1, 4 * H), k_rnn) + uni((1, 4 * H), k_rnn)   # b_ih + b_hh
        return (wih_t, whh_t, b)

    return {
        'hidden_size': H,
        'l0_fwd': lstm_dir(n_nts), 'l0_bwd': lstm_dir(n_nts),
        'l1_fwd': lstm_dir(R),     'l1_bwd': lstm_dir(R),
        'ctx': uni((R, 1), 0.1),                              # bin_context_vector
        'w_lin_t': uni((3 * R, out_dim), k_lin),              # Linear weight^T
        'b_lin': uni((1, out_dim), k_lin),
    }


def _pack_bidir(fwd, bwd, H):
    """Pack per-direction (W_ih^T, W_hh^T, b) into the fused interleaved layout."""
    wih_f, whh_f, b_f = fwd
    wih_b, whh_b, b_b = bwd
    In = wih_f.shape[0]
    wih = jnp.zeros((In, 8 * H), jnp.float32)
    whh = jnp.zeros((2 * H, 8 * H), jnp.float32)
    b = jnp.zeros((1, 8 * H), jnp.float32)
    for g in range(4):                    # gate order i, f, g, o
        cf = slice(g * 2 * H, g * 2 * H + H)          # fwd columns of gate g
        cb = slice(g * 2 * H + H, (g + 1) * 2 * H)    # bwd columns of gate g
        gs = slice(g * H, (g + 1) * H)
        wih = wih.at[:, cf].set(wih_f[:, gs])
        wih = wih.at[:, cb].set(wih_b[:, gs])
        whh = whh.at[0:H, cf].set(whh_f[:, gs])       # block-diagonal recurrence
        whh = whh.at[H:2 * H, cb].set(whh_b[:, gs])
        b = b.at[:, cf].set(b_f[:, gs])
        b = b.at[:, cb].set(b_b[:, gs])
    return wih, whh, b


def pack_params(raw):
    H = raw['hidden_size']
    wih0, whh0, b0 = _pack_bidir(raw['l0_fwd'], raw['l0_bwd'], H)
    wih1, whh1, b1 = _pack_bidir(raw['l1_fwd'], raw['l1_bwd'], H)
    return {
        'hidden_size': H,
        'wih0': wih0, 'whh0': whh0, 'b0': b0,
        'wih1': wih1, 'whh1': whh1, 'b1': b1,
        'ctx': jnp.reshape(raw['ctx'], (1, 1, 2 * H)),
        'w_lin_t': raw['w_lin_t'],
        'b_lin': raw['b_lin'],
    }


# ----------------------------------------------------------------------------
# Pure-JAX reference mirroring the PyTorch forward (incl. its reshape quirks)
# ----------------------------------------------------------------------------
def _ref_lstm_dir(x, wih_t, whh_t, b, H, reverse):
    T, B, _ = x.shape
    h = jnp.zeros((B, H), jnp.float32)
    c = jnp.zeros((B, H), jnp.float32)
    ys = [None] * T
    times = range(T - 1, -1, -1) if reverse else range(T)
    for t in times:
        g = x[t] @ wih_t + h @ whh_t + b
        i = jax.nn.sigmoid(g[:, 0:H])
        f = jax.nn.sigmoid(g[:, H:2 * H])
        gg = jnp.tanh(g[:, 2 * H:3 * H])
        o = jax.nn.sigmoid(g[:, 3 * H:4 * H])
        c = f * c + i * gg
        h = o * jnp.tanh(c)
        ys[t] = h
    return jnp.stack(ys, axis=0), h


def att_dna_reference(raw, iput):
    B, T, _ = iput.shape
    H = raw['hidden_size']
    R = 2 * H
    x = jnp.transpose(iput, (1, 0, 2)).astype(jnp.float32)
    y0f, h0f = _ref_lstm_dir(x, *raw['l0_fwd'], H, False)
    y0b, h0b = _ref_lstm_dir(x, *raw['l0_bwd'], H, True)
    y0 = jnp.concatenate([y0f, y0b], axis=2)
    y1f, h1f = _ref_lstm_dir(y0, *raw['l1_fwd'], H, False)
    y1b, h1b = _ref_lstm_dir(y0, *raw['l1_bwd'], H, True)
    lstm_out = jnp.concatenate([y1f, y1b], axis=2)            # == lstm_output.permute(1,0,2)

    h_n = jnp.stack([h0f, h0b, h1f, h1b], axis=0)             # (4, B, H)
    hidden_reshape = jnp.reshape(h_n, (-1, 4 * H))            # (B, 4H) torch .reshape quirk

    scores = jnp.einsum('tbr,r->tb', lstm_out, raw['ctx'][:, 0])
    alpha = jax.nn.softmax(scores, axis=1)                    # softmax over batch axis
    alpha_view = jnp.reshape(alpha, (B, 1, T))                # torch .view quirk
    xv = jnp.reshape(lstm_out, (B, T, R))                     # torch .reshape quirk
    repres = jnp.einsum('bot,btr->bor', alpha_view, xv)[:, 0, :]

    concat = jnp.concatenate([hidden_reshape, repres], axis=1)
    pred = jax.nn.sigmoid(concat @ raw['w_lin_t'] + raw['b_lin'])
    return pred, alpha


if __name__ == "__main__":
    # args = {n_nts: 4, n_bins: 8, bin_rnn_size: 16, num_layers: 2,
    #         bidirectional: True, dropout: 0}; out = 3; batch = 2
    B, T, n_nts, H, out_dim = 2, 8, 4, 16, 3
    key = jax.random.PRNGKey(0)
    pkey, xkey = jax.random.split(key)
    raw = init_params(pkey, n_nts, H, out_dim)
    packed = pack_params(raw)
    iput = jax.random.normal(xkey, (B, T, n_nts), jnp.float32)

    sigmoid_pred, bin_a = att_dna_forward(packed, iput)
    jax.block_until_ready((sigmoid_pred, bin_a))

    assert sigmoid_pred.shape == (B, out_dim), sigmoid_pred.shape
    assert bin_a.shape == (T, B), bin_a.shape
    assert bool(jnp.all(jnp.isfinite(sigmoid_pred))) and bool(jnp.all(jnp.isfinite(bin_a)))

    # Correctness check against a pure-JAX mirror of the PyTorch forward.
    pred_r, alpha_r = att_dna_reference(raw, iput)
    assert bool(jnp.allclose(sigmoid_pred, pred_r, atol=5e-3, rtol=5e-3)), (
        sigmoid_pred, pred_r)
    assert bool(jnp.allclose(bin_a, alpha_r, atol=5e-3, rtol=5e-3)), (bin_a, alpha_r)

    print("KERNEL_OK")
</pallas_src>

<mosaic_0001>
module attributes {stable_mosaic.version = 11 : i64} {
  func.func @_att_dna_kernel(%arg0: memref<16x4xf32, #tpu.memory_space<vmem>>, %arg1: memref<4x128xf32, #tpu.memory_space<vmem>>, %arg2: memref<32x128xf32, #tpu.memory_space<vmem>>, %arg3: memref<1x128xf32, #tpu.memory_space<vmem>>, %arg4: memref<32x128xf32, #tpu.memory_space<vmem>>, %arg5: memref<32x128xf32, #tpu.memory_space<vmem>>, %arg6: memref<1x128xf32, #tpu.memory_space<vmem>>, %arg7: memref<1x1x32xf32, #tpu.memory_space<vmem>>, %arg8: memref<96x3xf32, #tpu.memory_space<vmem>>, %arg9: memref<1x3xf32, #tpu.memory_space<vmem>>, %arg10: memref<2x3xf32, #tpu.memory_space<vmem>>, %arg11: memref<8x2xf32, #tpu.memory_space<vmem>>, %arg12: memref<2x96xf32, #tpu.memory_space<vmem>>) attributes {dimension_semantics = [], scalar_prefetch = 0 : i64, scratch_operands = 1 : i64, tpu.core_type = #tpu.core_type<tc>} {
    %0 = tpu.iota {dimensions = array<i32: 1>} : vector<1x128xi32>
    %c32_i32 = arith.constant 32 : i32
    %c0_i32 = arith.constant 0 : i32
    %1 = arith.cmpi eq, %c32_i32, %c0_i32 : i32
    %c1_i32 = arith.constant 1 : i32
    %2 = arith.select %1, %c1_i32, %c32_i32 : i32
    %3 = vector.broadcast %2 : i32 to vector<1x128xi32>
    %4 = arith.remsi %0, %3 : vector<1x128xi32>
    %c0_i32_0 = arith.constant 0 : i32
    %5 = vector.broadcast %c0_i32_0 : i32 to vector<1x128xi32>
    %6 = arith.cmpi ne, %4, %5 : vector<1x128xi32>
    %c0_i32_1 = arith.constant 0 : i32
    %7 = vector.broadcast %c0_i32_1 : i32 to vector<1x128xi32>
    %8 = arith.cmpi slt, %4, %7 : vector<1x128xi32>
    %c0_i32_2 = arith.constant 0 : i32
    %9 = arith.cmpi slt, %2, %c0_i32_2 : i32
    %10 = vector.broadcast %9 : i1 to vector<1x128xi1>
    %11 = vector.broadcast %10 : vector<1x128xi1> to vector<1x128xi1>
    %12 = arith.xori %8, %11 : vector<1x128xi1>
    %13 = arith.andi %12, %6 : vector<1x128xi1>
    %14 = vector.broadcast %2 : i32 to vector<1x128xi32>
    %15 = arith.addi %4, %14 : vector<1x128xi32>
    %16 = arith.select %13, %15, %4 : vector<1x128xi1>, vector<1x128xi32>
    %c16_i32 = arith.constant 16 : i32
    %17 = vector.broadcast %c16_i32 : i32 to vector<1x128xi32>
    %18 = arith.cmpi slt, %16, %17 : vector<1x128xi32>
    %c0 = arith.constant 0 : index
    %c0_3 = arith.constant 0 : index
    %19 = vector.load %arg0[%c0, %c0_3] : memref<16x4xf32, #tpu.memory_space<vmem>>, vector<16x4xf32>
    %c0_4 = arith.constant 0 : index
    %c0_5 = arith.constant 0 : index
    %20 = vector.load %arg1[%c0_4, %c0_5] : memref<4x128xf32, #tpu.memory_space<vmem>>, vector<4x128xf32>
    %cst = arith.constant dense<0.000000e+00> : vector<16x128xf32>
    %21 = tpu.matmul %19, %20, %cst {dimension_numbers = #tpu.dot_dimension_numbers<[1], [0], [0], [1], [0, 0, 1, 1], [], []>} : vector<16x4xf32>, vector<4x128xf32>, vector<16x128xf32> -> vector<16x128xf32>
    %c0_6 = arith.constant 0 : index
    %c0_7 = arith.constant 0 : index
    %22 = vector.load %arg3[%c0_6, %c0_7] : memref<1x128xf32, #tpu.memory_space<vmem>>, vector<1x128xf32>
    %23 = vector.broadcast %22 : vector<1x128xf32> to vector<16x128xf32>
    %24 = arith.addf %21, %23 : vector<16x128xf32>
    %c0_8 = arith.constant 0 : index
    %c0_9 = arith.constant 0 : index
    %25 = vector.load %arg2[%c0_8, %c0_9] : memref<32x128xf32, #tpu.memory_space<vmem>>, vector<32x128xf32>
    %cst_10 = arith.constant 0.000000e+00 : f32
    %26 = vector.broadcast %cst_10 : f32 to vector<2x32xf32>
    %cst_11 = arith.constant 0.000000e+00 : f32
    %27 = vector.broadcast %cst_11 : f32 to vector<2x32xf32>
    %28 = vector.extract_strided_slice %24 {offsets = [0, 0], sizes = [2, 128], strides = [1, 1]} : vector<16x128xf32> to vector<2x128xf32>
    %29 = vector.extract_strided_slice %24 {offsets = [14, 0], sizes = [2, 128], strides = [1, 1]} : vector<16x128xf32> to vector<2x128xf32>
    %30 = vector.shape_cast %18 : vector<1x128xi1> to vector<1x128xi1>
    %31 = vector.broadcast %30 : vector<1x128xi1> to vector<2x128xi1>
    %32 = arith.select %31, %28, %29 : vector<2x128xi1>, vector<2x128xf32>
    %cst_12 = arith.constant dense<0.000000e+00> : vector<2x128xf32>
    %33 = tpu.matmul %26, %25, %cst_12 {dimension_numbers = #tpu.dot_dimension_numbers<[1], [0], [0], [1], [0, 0, 1, 1], [], []>} : vector<2x32xf32>, vector<32x128xf32>, vector<2x128xf32> -> vector<2x128xf32>
    %34 = arith.addf %32, %33 : vector<2x128xf32>
    %35 = arith.negf %34 : vector<2x128xf32>
    %36 = math.exp %35 : vector<2x128xf32>
    %cst_13 = arith.constant 1.000000e+00 : f32
    %37 = vector.broadcast %cst_13 : f32 to vector<2x128xf32>
    %38 = arith.addf %37, %36 : vector<2x128xf32>
    %39 = arith.divf %37, %38 : vector<2x128xf32>
    %40 = vector.extract_strided_slice %39 {offsets = [0, 0], sizes = [2, 32], strides = [1, 1]} : vector<2x128xf32> to vector<2x32xf32>
    %41 = vector.extract_strided_slice %39 {offsets = [0, 32], sizes = [2, 32], strides = [1, 1]} : vector<2x128xf32> to vector<2x32xf32>
    %42 = vector.extract_strided_slice %34 {offsets = [0, 64], sizes = [2, 32], strides = [1, 1]} : vector<2x128xf32> to vector<2x32xf32>
    %43 = math.tanh %42 : vector<2x32xf32>
    %44 = vector.extract_strided_slice %39 {offsets = [0, 96], sizes = [2, 32], strides = [1, 1]} : vector<2x128xf32> to vector<2x32xf32>
    %45 = arith.mulf %41, %27 : vector<2x32xf32>
    %46 = arith.mulf %40, %43 : vector<2x32xf32>
    %47 = arith.addf %45, %46 : vector<2x32xf32>
    %48 = math.tanh %47 : vector<2x32xf32>
    %49 = arith.mulf %44, %48 : vector<2x32xf32>
    %50 = vector.extract_strided_slice %49 {offsets = [0, 0], sizes = [2, 16], strides = [1, 1]} : vector<2x32xf32> to vector<2x16xf32>
    %51 = vector.extract_strided_slice %49 {offsets = [0, 16], sizes = [2, 16], strides = [1, 1]} : vector<2x32xf32> to vector<2x16xf32>
    %52 = vector.extract_strided_slice %24 {offsets = [2, 0], sizes = [2, 128], strides = [1, 1]} : vector<16x128xf32> to vector<2x128xf32>
    %53 = vector.extract_strided_slice %24 {offsets = [12, 0], sizes = [2, 128], strides = [1, 1]} : vector<16x128xf32> to vector<2x128xf32>
    %54 = vector.shape_cast %18 : vector<1x128xi1> to vector<1x128xi1>
    %55 = vector.broadcast %54 : vector<1x128xi1> to vector<2x128xi1>
    %56 = arith.select %55, %52, %53 : vector<2x128xi1>, vector<2x128xf32>
    %cst_14 = arith.constant dense<0.000000e+00> : vector<2x128xf32>
    %57 = tpu.matmul %49, %25, %cst_14 {dimension_numbers = #tpu.dot_dimension_numbers<[1], [0], [0], [1], [0, 0, 1, 1], [], []>} : vector<2x32xf32>, vector<32x128xf32>, vector<2x128xf32> -> vector<2x128xf32>
    %58 = arith.addf %56, %57 : vector<2x128xf32>
    %59 = arith.negf %58 : vector<2x128xf32>
    %60 = math.exp %59 : vector<2x128xf32>
    %cst_15 = arith.constant 1.000000e+00 : f32
    %61 = vector.broadcast %cst_15 : f32 to vector<2x128xf32>
    %62 = arith.addf %61, %60 : vector<2x128xf32>
    %63 = arith.divf %61, %62 : vector<2x128xf32>
    %64 = vector.extract_strided_slice %63 {offsets = [0, 0], sizes = [2, 32], strides = [1, 1]} : vector<2x128xf32> to vector<2x32xf32>
    %65 = vector.extract_strided_slice %63 {offsets = [0, 32], sizes = [2, 32], strides = [1, 1]} : vector<2x128xf32> to vector<2x32xf32>
    %66 = vector.extract_strided_slice %58 {offsets = [0, 64], sizes = [2, 32], strides = [1, 1]} : vector<2x128xf32> to vector<2x32xf32>
    %67 = math.tanh %66 : vector<2x32xf32>
    %68 = vector.extract_strided_slice %63 {offsets = [0, 96], sizes = [2, 32], strides = [1, 1]} : vector<2x128xf32> to vector<2x32xf32>
    %69 = arith.mulf %65, %47 : vector<2x32xf32>
    %70 = arith.mulf %64, %67 : vector<2x32xf32>
    %71 = arith.addf %69, %70 : vector<2x32xf32>
    %72 = math.tanh %71 : vector<2x32xf32>
    %73 = arith.mulf %68, %72 : vector<2x32xf32>
    %74 = vector.extract_strided_slice %73 {offsets = [0, 0], sizes = [2, 16], strides = [1, 1]} : vector<2x32xf32> to vector<2x16xf32>
    %75 = vector.extract_strided_slice %73 {offsets = [0, 16], sizes = [2, 16], strides = [1, 1]} : vector<2x32xf32> to vector<2x16xf32>
    %76 = vector.extract_strided_slice %24 {offsets = [4, 0], sizes = [2, 128], strides = [1, 1]} : vector<16x128xf32> to vector<2x128xf32>
    %77 = vector.extract_strided_slice %24 {offsets = [10, 0], sizes = [2, 128], strides = [1, 1]} : vector<16x128xf32> to vector<2x128xf32>
    %78 = vector.shape_cast %18 : vector<1x128xi1> to vector<1x128xi1>
    %79 = vector.broadcast %78 : vector<1x128xi1> to vector<2x128xi1>
    %80 = arith.select %79, %76, %77 : vector<2x128xi1>, vector<2x128xf32>
    %cst_16 = arith.constant dense<0.000000e+00> : vector<2x128xf32>
    %81 = tpu.matmul %73, %25, %cst_16 {dimension_numbers = #tpu.dot_dimension_numbers<[1], [0], [0], [1], [0, 0, 1, 1], [], []>} : vector<2x32xf32>, vector<32x128xf32>, vector<2x128xf32> -> vector<2x128xf32>
    %82 = arith.addf %80, %81 : vector<2x128xf32>
    %83 = arith.negf %82 : vector<2x128xf32>
    %84 = math.exp %83 : vector<2x128xf32>
    %cst_17 = arith.constant 1.000000e+00 : f32
    %85 = vector.broadcast %cst_17 : f32 to vector<2x128xf32>
    %86 = arith.addf %85, %84 : vector<2x128xf32>
    %87 = arith.divf %85, %86 : vector<2x128xf32>
    %88 = vector.extract_strided_slice %87 {offsets = [0, 0], sizes = [2, 32], strides = [1, 1]} : vector<2x128xf32> to vector<2x32xf32>
    %89 = vector.extract_strided_slice %87 {offsets = [0, 32], sizes = [2, 32], strides = [1, 1]} : vector<2x128xf32> to vector<2x32xf32>
    %90 = vector.extract_strided_slice %82 {offsets = [0, 64], sizes = [2, 32], strides = [1, 1]} : vector<2x128xf32> to vector<2x32xf32>
    %91 = math.tanh %90 : vector<2x32xf32>
    %92 = vector.extract_strided_slice %87 {offsets = [0, 96], sizes = [2, 32], strides = [1, 1]} : vector<2x128xf32> to vector<2x32xf32>
    %93 = arith.mulf %89, %71 : vector<2x32xf32>
    %94 = arith.mulf %88, %91 : vector<2x32xf32>
    %95 = arith.addf %93, %94 : vector<2x32xf32>
    %96 = math.tanh %95 : vector<2x32xf32>
    %97 = arith.mulf %92, %96 : vector<2x32xf32>
    %98 = vector.extract_strided_slice %97 {offsets = [0, 0], sizes = [2, 16], strides = [1, 1]} : vector<2x32xf32> to vector<2x16xf32>
    %99 = vector.extract_strided_slice %97 {offsets = [0, 16], sizes = [2, 16], strides = [1, 1]} : vector<2x32xf32> to vector<2x16xf32>
    %100 = vector.extract_strided_slice %24 {offsets = [6, 0], sizes = [2, 128], strides = [1, 1]} : vector<16x128xf32> to vector<2x128xf32>
    %101 = vector.extract_strided_slice %24 {offsets = [8, 0], sizes = [2, 128], strides = [1, 1]} : vector<16x128xf32> to vector<2x128xf32>
    %102 = vector.shape_cast %18 : vector<1x128xi1> to vector<1x128xi1>
    %103 = vector.broadcast %102 : vector<1x128xi1> to vector<2x128xi1>
    %104 = arith.select %103, %100, %101 : vector<2x128xi1>, vector<2x128xf32>
    %cst_18 = arith.constant dense<0.000000e+00> : vector<2x128xf32>
    %105 = tpu.matmul %97, %25, %cst_18 {dimension_numbers = #tpu.dot_dimension_numbers<[1], [0], [0], [1], [0, 0, 1, 1], [], []>} : vector<2x32xf32>, vector<32x128xf32>, vector<2x128xf32> -> vector<2x128xf32>
    %106 = arith.addf %104, %105 : vector<2x128xf32>
    %107 = arith.negf %106 : vector<2x128xf32>
    %108 = math.exp %107 : vector<2x128xf32>
    %cst_19 = arith.constant 1.000000e+00 : f32
    %109 = vector.broadcast %cst_19 : f32 to vector<2x128xf32>
    %110 = arith.addf %109, %108 : vector<2x128xf32>
    %111 = arith.divf %109, %110 : vector<2x128xf32>
    %112 = vector.extract_strided_slice %111 {offsets = [0, 0], sizes = [2, 32], strides = [1, 1]} : vector<2x128xf32> to vector<2x32xf32>
    %113 = vector.extract_strided_slice %111 {offsets = [0, 32], sizes = [2, 32], strides = [1, 1]} : vector<2x128xf32> to vector<2x32xf32>
    %114 = vector.extract_strided_slice %106 {offsets = [0, 64], sizes = [2, 32], strides = [1, 1]} : vector<2x128xf32> to vector<2x32xf32>
    %115 = math.tanh %114 : vector<2x32xf32>
    %116 = vector.extract_strided_slice %111 {offsets = [0, 96], sizes = [2, 32], strides = [1, 1]} : vector<2x128xf32> to vector<2x32xf32>
    %117 = arith.mulf %113, %95 : vector<2x32xf32>
    %118 = arith.mulf %112, %115 : vector<2x32xf32>
    %119 = arith.addf %117, %118 : vector<2x32xf32>
    %120 = math.tanh %119 : vector<2x32xf32>
    %121 = arith.mulf %116, %120 : vector<2x32xf32>
    %122 = vector.extract_strided_slice %121 {offsets = [0, 0], sizes = [2, 16], strides = [1, 1]} : vector<2x32xf32> to vector<2x16xf32>
    %123 = vector.extract_strided_slice %121 {offsets = [0, 16], sizes = [2, 16], strides = [1, 1]} : vector<2x32xf32> to vector<2x16xf32>
    %124 = vector.extract_strided_slice %24 {offsets = [8, 0], sizes = [2, 128], strides = [1, 1]} : vector<16x128xf32> to vector<2x128xf32>
    %125 = vector.extract_strided_slice %24 {offsets = [6, 0], sizes = [2, 128], strides = [1, 1]} : vector<16x128xf32> to vector<2x128xf32>
    %126 = vector.shape_cast %18 : vector<1x128xi1> to vector<1x128xi1>
    %127 = vector.broadcast %126 : vector<1x128xi1> to vector<2x128xi1>
    %128 = arith.select %127, %124, %125 : vector<2x128xi1>, vector<2x128xf32>
    %cst_20 = arith.constant dense<0.000000e+00> : vector<2x128xf32>
    %129 = tpu.matmul %121, %25, %cst_20 {dimension_numbers = #tpu.dot_dimension_numbers<[1], [0], [0], [1], [0, 0, 1, 1], [], []>} : vector<2x32xf32>, vector<32x128xf32>, vector<2x128xf32> -> vector<2x128xf32>
    %130 = arith.addf %128, %129 : vector<2x128xf32>
    %131 = arith.negf %130 : vector<2x128xf32>
    %132 = math.exp %131 : vector<2x128xf32>
    %cst_21 = arith.constant 1.000000e+00 : f32
    %133 = vector.broadcast %cst_21 : f32 to vector<2x128xf32>
    %134 = arith.addf %133, %132 : vector<2x128xf32>
    %135 = arith.divf %133, %134 : vector<2x128xf32>
    %136 = vector.extract_strided_slice %135 {offsets = [0, 0], sizes = [2, 32], strides = [1, 1]} : vector<2x128xf32> to vector<2x32xf32>
    %137 = vector.extract_strided_slice %135 {offsets = [0, 32], sizes = [2, 32], strides = [1, 1]} : vector<2x128xf32> to vector<2x32xf32>
    %138 = vector.extract_strided_slice %130 {offsets = [0, 64], sizes = [2, 32], strides = [1, 1]} : vector<2x128xf32> to vector<2x32xf32>
    %139 = math.tanh %138 : vector<2x32xf32>
    %140 = vector.extract_strided_slice %135 {offsets = [0, 96], sizes = [2, 32], strides = [1, 1]} : vector<2x128xf32> to vector<2x32xf32>
    %141 = arith.mulf %137, %119 : vector<2x32xf32>
    %142 = arith.mulf %136, %139 : vector<2x32xf32>
    %143 = arith.addf %141, %142 : vector<2x32xf32>
    %144 = math.tanh %143 : vector<2x32xf32>
    %145 = arith.mulf %140, %144 : vector<2x32xf32>
    %146 = vector.extract_strided_slice %145 {offsets = [0, 0], sizes = [2, 16], strides = [1, 1]} : vector<2x32xf32> to vector<2x16xf32>
    %147 = vector.extract_strided_slice %145 {offsets = [0, 16], sizes = [2, 16], strides = [1, 1]} : vector<2x32xf32> to vector<2x16xf32>
    %148 = vector.extract_strided_slice %24 {offsets = [10, 0], sizes = [2, 128], strides = [1, 1]} : vector<16x128xf32> to vector<2x128xf32>
    %149 = vector.extract_strided_slice %24 {offsets = [4, 0], sizes = [2, 128], strides = [1, 1]} : vector<16x128xf32> to vector<2x128xf32>
    %150 = vector.shape_cast %18 : vector<1x128xi1> to vector<1x128xi1>
    %151 = vector.broadcast %150 : vector<1x128xi1> to vector<2x128xi1>
    %152 = arith.select %151, %148, %149 : vector<2x128xi1>, vector<2x128xf32>
    %cst_22 = arith.constant dense<0.000000e+00> : vector<2x128xf32>
    %153 = tpu.matmul %145, %25, %cst_22 {dimension_numbers = #tpu.dot_dimension_numbers<[1], [0], [0], [1], [0, 0, 1, 1], [], []>} : vector<2x32xf32>, vector<32x128xf32>, vector<2x128xf32> -> vector<2x128xf32>
    %154 = arith.addf %152, %153 : vector<2x128xf32>
    %155 = arith.negf %154 : vector<2x128xf32>
    %156 = math.exp %155 : vector<2x128xf32>
    %cst_23 = arith.constant 1.000000e+00 : f32
    %157 = vector.broadcast %cst_23 : f32 to vector<2x128xf32>
    %158 = arith.addf %157, %156 : vector<2x128xf32>
    %159 = arith.divf %157, %158 : vector<2x128xf32>
    %160 = vector.extract_strided_slice %159 {offsets = [0, 0], sizes = [2, 32], strides = [1, 1]} : vector<2x128xf32> to vector<2x32xf32>
    %161 = vector.extract_strided_slice %159 {offsets = [0, 32], sizes = [2, 32], strides = [1, 1]} : vector<2x128xf32> to vector<2x32xf32>
    %162 = vector.extract_strided_slice %154 {offsets = [0, 64], sizes = [2, 32], strides = [1, 1]} : vector<2x128xf32> to vector<2x32xf32>
    %163 = math.tanh %162 : vector<2x32xf32>
    %164 = vector.extract_strided_slice %159 {offsets = [0, 96], sizes = [2, 32], strides = [1, 1]} : vector<2x128xf32> to vector<2x32xf32>
    %165 = arith.mulf %161, %143 : vector<2x32xf32>
    %166 = arith.mulf %160, %163 : vector<2x32xf32>
    %167 = arith.addf %165, %166 : vector<2x32xf32>
    %168 = math.tanh %167 : vector<2x32xf32>
    %169 = arith.mulf %164, %168 : vector<2x32xf32>
    %170 = vector.extract_strided_slice %169 {offsets = [0, 0], sizes = [2, 16], strides = [1, 1]} : vector<2x32xf32> to vector<2x16xf32>
    %171 = vector.extract_strided_slice %169 {offsets = [0, 16], sizes = [2, 16], strides = [1, 1]} : vector<2x32xf32> to vector<2x16xf32>
    %172 = vector.extract_strided_slice %24 {offsets = [12, 0], sizes = [2, 128], strides = [1, 1]} : vector<16x128xf32> to vector<2x128xf32>
    %173 = vector.extract_strided_slice %24 {offsets = [2, 0], sizes = [2, 128], strides = [1, 1]} : vector<16x128xf32> to vector<2x128xf32>
    %174 = vector.shape_cast %18 : vector<1x128xi1> to vector<1x128xi1>
    %175 = vector.broadcast %174 : vector<1x128xi1> to vector<2x128xi1>
    %176 = arith.select %175, %172, %173 : vector<2x128xi1>, vector<2x128xf32>
    %cst_24 = arith.constant dense<0.000000e+00> : vector<2x128xf32>
    %177 = tpu.matmul %169, %25, %cst_24 {dimension_numbers = #tpu.dot_dimension_numbers<[1], [0], [0], [1], [0, 0, 1, 1], [], []>} : vector<2x32xf32>, vector<32x128xf32>, vector<2x128xf32> -> vector<2x128xf32>
    %178 = arith.addf %176, %177 : vector<2x128xf32>
    %179 = arith.negf %178 : vector<2x128xf32>
    %180 = math.exp %179 : vector<2x128xf32>
    %cst_25 = arith.constant 1.000000e+00 : f32
    %181 = vector.broadcast %cst_25 : f32 to vector<2x128xf32>
    %182 = arith.addf %181, %180 : vector<2x128xf32>
    %183 = arith.divf %181, %182 : vector<2x128xf32>
    %184 = vector.extract_strided_slice %183 {offsets = [0, 0], sizes = [2, 32], strides = [1, 1]} : vector<2x128xf32> to vector<2x32xf32>
    %185 = vector.extract_strided_slice %183 {offsets = [0, 32], sizes = [2, 32], strides = [1, 1]} : vector<2x128xf32> to vector<2x32xf32>
    %186 = vector.extract_strided_slice %178 {offsets = [0, 64], sizes = [2, 32], strides = [1, 1]} : vector<2x128xf32> to vector<2x32xf32>
    %187 = math.tanh %186 : vector<2x32xf32>
    %188 = vector.extract_strided_slice %183 {offsets = [0, 96], sizes = [2, 32], strides = [1, 1]} : vector<2x128xf32> to vector<2x32xf32>
    %189 = arith.mulf %185, %167 : vector<2x32xf32>
    %190 = arith.mulf %184, %187 : vector<2x32xf32>
    %191 = arith.addf %189, %190 : vector<2x32xf32>
    %192 = math.tanh %191 : vector<2x32xf32>
    %193 = arith.mulf %188, %192 : vector<2x32xf32>
    %194 = vector.extract_strided_slice %193 {offsets = [0, 0], sizes = [2, 16], strides = [1, 1]} : vector<2x32xf32> to vector<2x16xf32>
    %195 = vector.extract_strided_slice %193 {offsets = [0, 16], sizes = [2, 16], strides = [1, 1]} : vector<2x32xf32> to vector<2x16xf32>
    %196 = vector.extract_strided_slice %24 {offsets = [14, 0], sizes = [2, 128], strides = [1, 1]} : vector<16x128xf32> to vector<2x128xf32>
    %197 = vector.extract_strided_slice %24 {offsets = [0, 0], sizes = [2, 128], strides = [1, 1]} : vector<16x128xf32> to vector<2x128xf32>
    %198 = vector.shape_cast %18 : vector<1x128xi1> to vector<1x128xi1>
    %199 = vector.broadcast %198 : vector<1x128xi1> to vector<2x128xi1>
    %200 = arith.select %199, %196, %197 : vector<2x128xi1>, vector<2x128xf32>
    %cst_26 = arith.constant dense<0.000000e+00> : vector<2x128xf32>
    %201 = tpu.matmul %193, %25, %cst_26 {dimension_numbers = #tpu.dot_dimension_numbers<[1], [0], [0], [1], [0, 0, 1, 1], [], []>} : vector<2x32xf32>, vector<32x128xf32>, vector<2x128xf32> -> vector<2x128xf32>
    %202 = arith.addf %200, %201 : vector<2x128xf32>
    %203 = arith.negf %202 : vector<2x128xf32>
    %204 = math.exp %203 : vector<2x128xf32>
    %cst_27 = arith.constant 1.000000e+00 : f32
    %205 = vector.broadcast %cst_27 : f32 to vector<2x128xf32>
    %206 = arith.addf %205, %204 : vector<2x128xf32>
    %207 = arith.divf %205, %206 : vector<2x128xf32>
    %208 = vector.extract_strided_slice %207 {offsets = [0, 0], sizes = [2, 32], strides = [1, 1]} : vector<2x128xf32> to vector<2x32xf32>
    %209 = vector.extract_strided_slice %207 {offsets = [0, 32], sizes = [2, 32], strides = [1, 1]} : vector<2x128xf32> to vector<2x32xf32>
    %210 = vector.extract_strided_slice %202 {offsets = [0, 64], sizes = [2, 32], strides = [1, 1]} : vector<2x128xf32> to vector<2x32xf32>
    %211 = math.tanh %210 : vector<2x32xf32>
    %212 = vector.extract_strided_slice %207 {offsets = [0, 96], sizes = [2, 32], strides = [1, 1]} : vector<2x128xf32> to vector<2x32xf32>
    %213 = arith.mulf %209, %191 : vector<2x32xf32>
    %214 = arith.mulf %208, %211 : vector<2x32xf32>
    %215 = arith.addf %213, %214 : vector<2x32xf32>
    %216 = math.tanh %215 : vector<2x32xf32>
    %217 = arith.mulf %212, %216 : vector<2x32xf32>
    %218 = vector.extract_strided_slice %217 {offsets = [0, 0], sizes = [2, 16], strides = [1, 1]} : vector<2x32xf32> to vector<2x16xf32>
    %219 = vector.extract_strided_slice %217 {offsets = [0, 16], sizes = [2, 16], strides = [1, 1]} : vector<2x32xf32> to vector<2x16xf32>
    %220 = tpu.concatenate %50, %219 in 1 : vector<2x16xf32>, vector<2x16xf32> -> vector<2x32xf32>
    %221 = tpu.concatenate %74, %195 in 1 : vector<2x16xf32>, vector<2x16xf32> -> vector<2x32xf32>
    %222 = tpu.concatenate %98, %171 in 1 : vector<2x16xf32>, vector<2x16xf32> -> vector<2x32xf32>
    %223 = tpu.concatenate %122, %147 in 1 : vector<2x16xf32>, vector<2x16xf32> -> vector<2x32xf32>
    %224 = tpu.concatenate %146, %123 in 1 : vector<2x16xf32>, vector<2x16xf32> -> vector<2x32xf32>
    %225 = tpu.concatenate %170, %99 in 1 : vector<2x16xf32>, vector<2x16xf32> -> vector<2x32xf32>
    %226 = tpu.concatenate %194, %75 in 1 : vector<2x16xf32>, vector<2x16xf32> -> vector<2x32xf32>
    %227 = tpu.concatenate %218, %51 in 1 : vector<2x16xf32>, vector<2x16xf32> -> vector<2x32xf32>
    %228 = tpu.concatenate %220, %221, %222, %223, %224, %225, %226, %227 in 0 : vector<2x32xf32>, vector<2x32xf32>, vector<2x32xf32>, vector<2x32xf32>, vector<2x32xf32>, vector<2x32xf32>, vector<2x32xf32>, vector<2x32xf32> -> vector<16x32xf32>
    %c0_28 = arith.constant 0 : index
    %c0_29 = arith.constant 0 : index
    %229 = vector.load %arg4[%c0_28, %c0_29] : memref<32x128xf32, #tpu.memory_space<vmem>>, vector<32x128xf32>
    %cst_30 = arith.constant dense<0.000000e+00> : vector<16x128xf32>
    %230 = tpu.matmul %228, %229, %cst_30 {dimension_numbers = #tpu.dot_dimension_numbers<[1], [0], [0], [1], [0, 0, 1, 1], [], []>} : vector<16x32xf32>, vector<32x128xf32>, vector<16x128xf32> -> vector<16x128xf32>
    %c0_31 = arith.constant 0 : index
    %c0_32 = arith.constant 0 : index
    %231 = vector.load %arg6[%c0_31, %c0_32] : memref<1x128xf32, #tpu.memory_space<vmem>>, vector<1x128xf32>
    %232 = vector.broadcast %231 : vector<1x128xf32> to vector<16x128xf32>
    %233 = arith.addf %230, %232 : vector<16x128xf32>
    %c0_33 = arith.constant 0 : index
    %c0_34 = arith.constant 0 : index
    %234 = vector.load %arg5[%c0_33, %c0_34] : memref<32x128xf32, #tpu.memory_space<vmem>>, vector<32x128xf32>
    %cst_35 = arith.constant 0.000000e+00 : f32
    %235 = vector.broadcast %cst_35 : f32 to vector<2x32xf32>
    %cst_36 = arith.constant 0.000000e+00 : f32
    %236 = vector.broadcast %cst_36 : f32 to vector<2x32xf32>
    %237 = vector.extract_strided_slice %233 {offsets = [0, 0], sizes = [2, 128], strides = [1, 1]} : vector<16x128xf32> to vector<2x128xf32>
    %238 = vector.extract_strided_slice %233 {offsets = [14, 0], sizes = [2, 128], strides = [1, 1]} : vector<16x128xf32> to vector<2x128xf32>
    %239 = vector.shape_cast %18 : vector<1x128xi1> to vector<1x128xi1>
    %240 = vector.broadcast %239 : vector<1x128xi1> to vector<2x128xi1>
    %241 = arith.select %240, %237, %238 : vector<2x128xi1>, vector<2x128xf32>
    %cst_37 = arith.constant dense<0.000000e+00> : vector<2x128xf32>
    %242 = tpu.matmul %235, %234, %cst_37 {dimension_numbers = #tpu.dot_dimension_numbers<[1], [0], [0], [1], [0, 0, 1, 1], [], []>} : vector<2x32xf32>, vector<32x128xf32>, vector<2x128xf32> -> vector<2x128xf32>
    %243 = arith.addf %241, %242 : vector<2x128xf32>
    %244 = arith.negf %243 : vector<2x128xf32>
    %245 = math.exp %244 : vector<2x128xf32>
    %cst_38 = arith.constant 1.000000e+00 : f32
    %246 = vector.broadcast %cst_38 : f32 to vector<2x128xf32>
    %247 = arith.addf %246, %245 : vector<2x128xf32>
    %248 = arith.divf %246, %247 : vector<2x128xf32>
    %249 = vector.extract_strided_slice %248 {offsets = [0, 0], sizes = [2, 32], strides = [1, 1]} : vector<2x128xf32> to vector<2x32xf32>
    %250 = vector.extract_strided_slice %248 {offsets = [0, 32], sizes = [2, 32], strides = [1, 1]} : vector<2x128xf32> to vector<2x32xf32>
    %251 = vector.extract_strided_slice %243 {offsets = [0, 64], sizes = [2, 32], strides = [1, 1]} : vector<2x128xf32> to vector<2x32xf32>
    %252 = math.tanh %251 : vector<2x32xf32>
    %253 = vector.extract_strided_slice %248 {offsets = [0, 96], sizes = [2, 32], strides = [1, 1]} : vector<2x128xf32> to vector<2x32xf32>
    %254 = arith.mulf %250, %236 : vector<2x32xf32>
    %255 = arith.mulf %249, %252 : vector<2x32xf32>
    %256 = arith.addf %254, %255 : vector<2x32xf32>
    %257 = math.tanh %256 : vector<2x32xf32>
    %258 = arith.mulf %253, %257 : vector<2x32xf32>
    %259 = vector.extract_strided_slice %258 {offsets = [0, 0], sizes = [2, 16], strides = [1, 1]} : vector<2x32xf32> to vector<2x16xf32>
    %260 = vector.extract_strided_slice %258 {offsets = [0, 16], sizes = [2, 16], strides = [1, 1]} : vector<2x32xf32> to vector<2x16xf32>
    %261 = vector.extract_strided_slice %233 {offsets = [2, 0], sizes = [2, 128], strides = [1, 1]} : vector<16x128xf32> to vector<2x128xf32>
    %262 = vector.extract_strided_slice %233 {offsets = [12, 0], sizes = [2, 128], strides = [1, 1]} : vector<16x128xf32> to vector<2x128xf32>
    %263 = vector.shape_cast %18 : vector<1x128xi1> to vector<1x128xi1>
    %264 = vector.broadcast %263 : vector<1x128xi1> to vector<2x128xi1>
    %265 = arith.select %264, %261, %262 : vector<2x128xi1>, vector<2x128xf32>
    %cst_39 = arith.constant dense<0.000000e+00> : vector<2x128xf32>
    %266 = tpu.matmul %258, %234, %cst_39 {dimension_numbers = #tpu.dot_dimension_numbers<[1], [0], [0], [1], [0, 0, 1, 1], [], []>} : vector<2x32xf32>, vector<32x128xf32>, vector<2x128xf32> -> vector<2x128xf32>
    %267 = arith.addf %265, %266 : vector<2x128xf32>
    %268 = arith.negf %267 : vector<2x128xf32>
    %269 = math.exp %268 : vector<2x128xf32>
    %cst_40 = arith.constant 1.000000e+00 : f32
    %270 = vector.broadcast %cst_40 : f32 to vector<2x128xf32>
    %271 = arith.addf %270, %269 : vector<2x128xf32>
    %272 = arith.divf %270, %271 : vector<2x128xf32>
    %273 = vector.extract_strided_slice %272 {offsets = [0, 0], sizes = [2, 32], strides = [1, 1]} : vector<2x128xf32> to vector<2x32xf32>
    %274 = vector.extract_strided_slice %272 {offsets = [0, 32], sizes = [2, 32], strides = [1, 1]} : vector<2x128xf32> to vector<2x32xf32>
    %275 = vector.extract_strided_slice %267 {offsets = [0, 64], sizes = [2, 32], strides = [1, 1]} : vector<2x128xf32> to vector<2x32xf32>
    %276 = math.tanh %275 : vector<2x32xf32>
    %277 = vector.extract_strided_slice %272 {offsets = [0, 96], sizes = [2, 32], strides = [1, 1]} : vector<2x128xf32> to vector<2x32xf32>
    %278 = arith.mulf %274, %256 : vector<2x32xf32>
    %279 = arith.mulf %273, %276 : vector<2x32xf32>
    %280 = arith.addf %278, %279 : vector<2x32xf32>
    %281 = math.tanh %280 : vector<2x32xf32>
    %282 = arith.mulf %277, %281 : vector<2x32xf32>
    %283 = vector.extract_strided_slice %282 {offsets = [0, 0], sizes = [2, 16], strides = [1, 1]} : vector<2x32xf32> to vector<2x16xf32>
    %284 = vector.extract_strided_slice %282 {offsets = [0, 16], sizes = [2, 16], strides = [1, 1]} : vector<2x32xf32> to vector<2x16xf32>
    %285 = vector.extract_strided_slice %233 {offsets = [4, 0], sizes = [2, 128], strides = [1, 1]} : vector<16x128xf32> to vector<2x128xf32>
    %286 = vector.extract_strided_slice %233 {offsets = [10, 0], sizes = [2, 128], strides = [1, 1]} : vector<16x128xf32> to vector<2x128xf32>
    %287 = vector.shape_cast %18 : vector<1x128xi1> to vector<1x128xi1>
    %288 = vector.broadcast %287 : vector<1x128xi1> to vector<2x128xi1>
    %289 = arith.select %288, %285, %286 : vector<2x128xi1>, vector<2x128xf32>
    %cst_41 = arith.constant dense<0.000000e+00> : vector<2x128xf32>
    %290 = tpu.matmul %282, %234, %cst_41 {dimension_numbers = #tpu.dot_dimension_numbers<[1], [0], [0], [1], [0, 0, 1, 1], [], []>} : vector<2x32xf32>, vector<32x128xf32>, vector<2x128xf32> -> vector<2x128xf32>
    %291 = arith.addf %289, %290 : vector<2x128xf32>
    %292 = arith.negf %291 : vector<2x128xf32>
    %293 = math.exp %292 : vector<2x128xf32>
    %cst_42 = arith.constant 1.000000e+00 : f32
    %294 = vector.broadcast %cst_42 : f32 to vector<2x128xf32>
    %295 = arith.addf %294, %293 : vector<2x128xf32>
    %296 = arith.divf %294, %295 : vector<2x128xf32>
    %297 = vector.extract_strided_slice %296 {offsets = [0, 0], sizes = [2, 32], strides = [1, 1]} : vector<2x128xf32> to vector<2x32xf32>
    %298 = vector.extract_strided_slice %296 {offsets = [0, 32], sizes = [2, 32], strides = [1, 1]} : vector<2x128xf32> to vector<2x32xf32>
    %299 = vector.extract_strided_slice %291 {offsets = [0, 64], sizes = [2, 32], strides = [1, 1]} : vector<2x128xf32> to vector<2x32xf32>
    %300 = math.tanh %299 : vector<2x32xf32>
    %301 = vector.extract_strided_slice %296 {offsets = [0, 96], sizes = [2, 32], strides = [1, 1]} : vector<2x128xf32> to vector<2x32xf32>
    %302 = arith.mulf %298, %280 : vector<2x32xf32>
    %303 = arith.mulf %297, %300 : vector<2x32xf32>
    %304 = arith.addf %302, %303 : vector<2x32xf32>
    %305 = math.tanh %304 : vector<2x32xf32>
    %306 = arith.mulf %301, %305 : vector<2x32xf32>
    %307 = vector.extract_strided_slice %306 {offsets = [0, 0], sizes = [2, 16], strides = [1, 1]} : vector<2x32xf32> to vector<2x16xf32>
    %308 = vector.extract_strided_slice %306 {offsets = [0, 16], sizes = [2, 16], strides = [1, 1]} : vector<2x32xf32> to vector<2x16xf32>
    %309 = vector.extract_strided_slice %233 {offsets = [6, 0], sizes = [2, 128], strides = [1, 1]} : vector<16x128xf32> to vector<2x128xf32>
    %310 = vector.extract_strided_slice %233 {offsets = [8, 0], sizes = [2, 128], strides = [1, 1]} : vector<16x128xf32> to vector<2x128xf32>
    %311 = vector.shape_cast %18 : vector<1x128xi1> to vector<1x128xi1>
    %312 = vector.broadcast %311 : vector<1x128xi1> to vector<2x128xi1>
    %313 = arith.select %312, %309, %310 : vector<2x128xi1>, vector<2x128xf32>
    %cst_43 = arith.constant dense<0.000000e+00> : vector<2x128xf32>
    %314 = tpu.matmul %306, %234, %cst_43 {dimension_numbers = #tpu.dot_dimension_numbers<[1], [0], [0], [1], [0, 0, 1, 1], [], []>} : vector<2x32xf32>, vector<32x128xf32>, vector<2x128xf32> -> vector<2x128xf32>
    %315 = arith.addf %313, %314 : vector<2x128xf32>
    %316 = arith.negf %315 : vector<2x128xf32>
    %317 = math.exp %316 : vector<2x128xf32>
    %cst_44 = arith.constant 1.000000e+00 : f32
    %318 = vector.broadcast %cst_44 : f32 to vector<2x128xf32>
    %319 = arith.addf %318, %317 : vector<2x128xf32>
    %320 = arith.divf %318, %319 : vector<2x128xf32>
    %321 = vector.extract_strided_slice %320 {offsets = [0, 0], sizes = [2, 32], strides = [1, 1]} : vector<2x128xf32> to vector<2x32xf32>
    %322 = vector.extract_strided_slice %320 {offsets = [0, 32], sizes = [2, 32], strides = [1, 1]} : vector<2x128xf32> to vector<2x32xf32>
    %323 = vector.extract_strided_slice %315 {offsets = [0, 64], sizes = [2, 32], strides = [1, 1]} : vector<2x128xf32> to vector<2x32xf32>
    %324 = math.tanh %323 : vector<2x32xf32>
    %325 = vector.extract_strided_slice %320 {offsets = [0, 96], sizes = [2, 32], strides = [1, 1]} : vector<2x128xf32> to vector<2x32xf32>
    %326 = arith.mulf %322, %304 : vector<2x32xf32>
    %327 = arith.mulf %321, %324 : vector<2x32xf32>
    %328 = arith.addf %326, %327 : vector<2x32xf32>
    %329 = math.tanh %328 : vector<2x32xf32>
    %330 = arith.mulf %325, %329 : vector<2x32xf32>
    %331 = vector.extract_strided_slice %330 {offsets = [0, 0], sizes = [2, 16], strides = [1, 1]} : vector<2x32xf32> to vector<2x16xf32>
    %332 = vector.extract_strided_slice %330 {offsets = [0, 16], sizes = [2, 16], strides = [1, 1]} : vector<2x32xf32> to vector<2x16xf32>
    %333 = vector.extract_strided_slice %233 {offsets = [8, 0], sizes = [2, 128], strides = [1, 1]} : vector<16x128xf32> to vector<2x128xf32>
    %334 = vector.extract_strided_slice %233 {offsets = [6, 0], sizes = [2, 128], strides = [1, 1]} : vector<16x128xf32> to vector<2x128xf32>
    %335 = vector.shape_cast %18 : vector<1x128xi1> to vector<1x128xi1>
    %336 = vector.broadcast %335 : vector<1x128xi1> to vector<2x128xi1>
    %337 = arith.select %336, %333, %334 : vector<2x128xi1>, vector<2x128xf32>
    %cst_45 = arith.constant dense<0.000000e+00> : vector<2x128xf32>
    %338 = tpu.matmul %330, %234, %cst_45 {dimension_numbers = #tpu.dot_dimension_numbers<[1], [0], [0], [1], [0, 0, 1, 1], [], []>} : vector<2x32xf32>, vector<32x128xf32>, vector<2x128xf32> -> vector<2x128xf32>
    %339 = arith.addf %337, %338 : vector<2x128xf32>
    %340 = arith.negf %339 : vector<2x128xf32>
    %341 = math.exp %340 : vector<2x128xf32>
    %cst_46 = arith.constant 1.000000e+00 : f32
    %342 = vector.broadcast %cst_46 : f32 to vector<2x128xf32>
    %343 = arith.addf %342, %341 : vector<2x128xf32>
    %344 = arith.divf %342, %343 : vector<2x128xf32>
    %345 = vector.extract_strided_slice %344 {offsets = [0, 0], sizes = [2, 32], strides = [1, 1]} : vector<2x128xf32> to vector<2x32xf32>
    %346 = vector.extract_strided_slice %344 {offsets = [0, 32], sizes = [2, 32], strides = [1, 1]} : vector<2x128xf32> to vector<2x32xf32>
    %347 = vector.extract_strided_slice %339 {offsets = [0, 64], sizes = [2, 32], strides = [1, 1]} : vector<2x128xf32> to vector<2x32xf32>
    %348 = math.tanh %347 : vector<2x32xf32>
    %349 = vector.extract_strided_slice %344 {offsets = [0, 96], sizes = [2, 32], strides = [1, 1]} : vector<2x128xf32> to vector<2x32xf32>
    %350 = arith.mulf %346, %328 : vector<2x32xf32>
    %351 = arith.mulf %345, %348 : vector<2x32xf32>
    %352 = arith.addf %350, %351 : vector<2x32xf32>
    %353 = math.tanh %352 : vector<2x32xf32>
    %354 = arith.mulf %349, %353 : vector<2x32xf32>
    %355 = vector.extract_strided_slice %354 {offsets = [0, 0], sizes = [2, 16], strides = [1, 1]} : vector<2x32xf32> to vector<2x16xf32>
    %356 = vector.extract_strided_slice %354 {offsets = [0, 16], sizes = [2, 16], strides = [1, 1]} : vector<2x32xf32> to vector<2x16xf32>
    %357 = vector.extract_strided_slice %233 {offsets = [10, 0], sizes = [2, 128], strides = [1, 1]} : vector<16x128xf32> to vector<2x128xf32>
    %358 = vector.extract_strided_slice %233 {offsets = [4, 0], sizes = [2, 128], strides = [1, 1]} : vector<16x128xf32> to vector<2x128xf32>
    %359 = vector.shape_cast %18 : vector<1x128xi1> to vector<1x128xi1>
    %360 = vector.broadcast %359 : vector<1x128xi1> to vector<2x128xi1>
    %361 = arith.select %360, %357, %358 : vector<2x128xi1>, vector<2x128xf32>
    %cst_47 = arith.constant dense<0.000000e+00> : vector<2x128xf32>
    %362 = tpu.matmul %354, %234, %cst_47 {dimension_numbers = #tpu.dot_dimension_numbers<[1], [0], [0], [1], [0, 0, 1, 1], [], []>} : vector<2x32xf32>, vector<32x128xf32>, vector<2x128xf32> -> vector<2x128xf32>
    %363 = arith.addf %361, %362 : vector<2x128xf32>
    %364 = arith.negf %363 : vector<2x128xf32>
    %365 = math.exp %364 : vector<2x128xf32>
    %cst_48 = arith.constant 1.000000e+00 : f32
    %366 = vector.broadcast %cst_48 : f32 to vector<2x128xf32>
    %367 = arith.addf %366, %365 : vector<2x128xf32>
    %368 = arith.divf %366, %367 : vector<2x128xf32>
    %369 = vector.extract_strided_slice %368 {offsets = [0, 0], sizes = [2, 32], strides = [1, 1]} : vector<2x128xf32> to vector<2x32xf32>
    %370 = vector.extract_strided_slice %368 {offsets = [0, 32], sizes = [2, 32], strides = [1, 1]} : vector<2x128xf32> to vector<2x32xf32>
    %371 = vector.extract_strided_slice %363 {offsets = [0, 64], sizes = [2, 32], strides = [1, 1]} : vector<2x128xf32> to vector<2x32xf32>
    %372 = math.tanh %371 : vector<2x32xf32>
    %373 = vector.extract_strided_slice %368 {offsets = [0, 96], sizes = [2, 32], strides = [1, 1]} : vector<2x128xf32> to vector<2x32xf32>
    %374 = arith.mulf %370, %352 : vector<2x32xf32>
    %375 = arith.mulf %369, %372 : vector<2x32xf32>
    %376 = arith.addf %374, %375 : vector<2x32xf32>
    %377 = math.tanh %376 : vector<2x32xf32>
    %378 = arith.mulf %373, %377 : vector<2x32xf32>
    %379 = vector.extract_strided_slice %378 {offsets = [0, 0], sizes = [2, 16], strides = [1, 1]} : vector<2x32xf32> to vector<2x16xf32>
    %380 = vector.extract_strided_slice %378 {offsets = [0, 16], sizes = [2, 16], strides = [1, 1]} : vector<2x32xf32> to vector<2x16xf32>
    %381 = vector.extract_strided_slice %233 {offsets = [12, 0], sizes = [2, 128], strides = [1, 1]} : vector<16x128xf32> to vector<2x128xf32>
    %382 = vector.extract_strided_slice %233 {offsets = [2, 0], sizes = [2, 128], strides = [1, 1]} : vector<16x128xf32> to vector<2x128xf32>
    %383 = vector.shape_cast %18 : vector<1x128xi1> to vector<1x128xi1>
    %384 = vector.broadcast %383 : vector<1x128xi1> to vector<2x128xi1>
    %385 = arith.select %384, %381, %382 : vector<2x128xi1>, vector<2x128xf32>
    %cst_49 = arith.constant dense<0.000000e+00> : vector<2x128xf32>
    %386 = tpu.matmul %378, %234, %cst_49 {dimension_numbers = #tpu.dot_dimension_numbers<[1], [0], [0], [1], [0, 0, 1, 1], [], []>} : vector<2x32xf32>, vector<32x128xf32>, vector<2x128xf32> -> vector<2x128xf32>
    %387 = arith.addf %385, %386 : vector<2x128xf32>
    %388 = arith.negf %387 : vector<2x128xf32>
    %389 = math.exp %388 : vector<2x128xf32>
    %cst_50 = arith.constant 1.000000e+00 : f32
    %390 = vector.broadcast %cst_50 : f32 to vector<2x128xf32>
    %391 = arith.addf %390, %389 : vector<2x128xf32>
    %392 = arith.divf %390, %391 : vector<2x128xf32>
    %393 = vector.extract_strided_slice %392 {offsets = [0, 0], sizes = [2, 32], strides = [1, 1]} : vector<2x128xf32> to vector<2x32xf32>
    %394 = vector.extract_strided_slice %392 {offsets = [0, 32], sizes = [2, 32], strides = [1, 1]} : vector<2x128xf32> to vector<2x32xf32>
    %395 = vector.extract_strided_slice %387 {offsets = [0, 64], sizes = [2, 32], strides = [1, 1]} : vector<2x128xf32> to vector<2x32xf32>
    %396 = math.tanh %395 : vector<2x32xf32>
    %397 = vector.extract_strided_slice %392 {offsets = [0, 96], sizes = [2, 32], strides = [1, 1]} : vector<2x128xf32> to vector<2x32xf32>
    %398 = arith.mulf %394, %376 : vector<2x32xf32>
    %399 = arith.mulf %393, %396 : vector<2x32xf32>
    %400 = arith.addf %398, %399 : vector<2x32xf32>
    %401 = math.tanh %400 : vector<2x32xf32>
    %402 = arith.mulf %397, %401 : vector<2x32xf32>
    %403 = vector.extract_strided_slice %402 {offsets = [0, 0], sizes = [2, 16], strides = [1, 1]} : vector<2x32xf32> to vector<2x16xf32>
    %404 = vector.extract_strided_slice %402 {offsets = [0, 16], sizes = [2, 16], strides = [1, 1]} : vector<2x32xf32> to vector<2x16xf32>
    %405 = vector.extract_strided_slice %233 {offsets = [14, 0], sizes = [2, 128], strides = [1, 1]} : vector<16x128xf32> to vector<2x128xf32>
    %406 = vector.extract_strided_slice %233 {offsets = [0, 0], sizes = [2, 128], strides = [1, 1]} : vector<16x128xf32> to vector<2x128xf32>
    %407 = vector.shape_cast %18 : vector<1x128xi1> to vector<1x128xi1>
    %408 = vector.broadcast %407 : vector<1x128xi1> to vector<2x128xi1>
    %409 = arith.select %408, %405, %406 : vector<2x128xi1>, vector<2x128xf32>
    %cst_51 = arith.constant dense<0.000000e+00> : vector<2x128xf32>
    %410 = tpu.matmul %402, %234, %cst_51 {dimension_numbers = #tpu.dot_dimension_numbers<[1], [0], [0], [1], [0, 0, 1, 1], [], []>} : vector<2x32xf32>, vector<32x128xf32>, vector<2x128xf32> -> vector<2x128xf32>
    %411 = arith.addf %409, %410 : vector<2x128xf32>
    %412 = arith.negf %411 : vector<2x128xf32>
    %413 = math.exp %412 : vector<2x128xf32>
    %cst_52 = arith.constant 1.000000e+00 : f32
    %414 = vector.broadcast %cst_52 : f32 to vector<2x128xf32>
    %415 = arith.addf %414, %413 : vector<2x128xf32>
    %416 = arith.divf %414, %415 : vector<2x128xf32>
    %417 = vector.extract_strided_slice %416 {offsets = [0, 0], sizes = [2, 32], strides = [1, 1]} : vector<2x128xf32> to vector<2x32xf32>
    %418 = vector.extract_strided_slice %416 {offsets = [0, 32], sizes = [2, 32], strides = [1, 1]} : vector<2x128xf32> to vector<2x32xf32>
    %419 = vector.extract_strided_slice %411 {offsets = [0, 64], sizes = [2, 32], strides = [1, 1]} : vector<2x128xf32> to vector<2x32xf32>
    %420 = math.tanh %419 : vector<2x32xf32>
    %421 = vector.extract_strided_slice %416 {offsets = [0, 96], sizes = [2, 32], strides = [1, 1]} : vector<2x128xf32> to vector<2x32xf32>
    %422 = arith.mulf %418, %400 : vector<2x32xf32>
    %423 = arith.mulf %417, %420 : vector<2x32xf32>
    %424 = arith.addf %422, %423 : vector<2x32xf32>
    %425 = math.tanh %424 : vector<2x32xf32>
    %426 = arith.mulf %421, %425 : vector<2x32xf32>
    %427 = vector.extract_strided_slice %426 {offsets = [0, 0], sizes = [2, 16], strides = [1, 1]} : vector<2x32xf32> to vector<2x16xf32>
    %428 = vector.extract_strided_slice %426 {offsets = [0, 16], sizes = [2, 16], strides = [1, 1]} : vector<2x32xf32> to vector<2x16xf32>
    %429 = tpu.concatenate %259, %428 in 1 : vector<2x16xf32>, vector<2x16xf32> -> vector<2x32xf32>
    %430 = tpu.concatenate %283, %404 in 1 : vector<2x16xf32>, vector<2x16xf32> -> vector<2x32xf32>
    %431 = tpu.concatenate %307, %380 in 1 : vector<2x16xf32>, vector<2x16xf32> -> vector<2x32xf32>
    %432 = tpu.concatenate %331, %356 in 1 : vector<2x16xf32>, vector<2x16xf32> -> vector<2x32xf32>
    %433 = tpu.concatenate %355, %332 in 1 : vector<2x16xf32>, vector<2x16xf32> -> vector<2x32xf32>
    %434 = tpu.concatenate %379, %308 in 1 : vector<2x16xf32>, vector<2x16xf32> -> vector<2x32xf32>
    %435 = tpu.concatenate %403, %284 in 1 : vector<2x16xf32>, vector<2x16xf32> -> vector<2x32xf32>
    %436 = tpu.concatenate %427, %260 in 1 : vector<2x16xf32>, vector<2x16xf32> -> vector<2x32xf32>
    %437 = vector.shape_cast %429 : vector<2x32xf32> to vector<1x2x32xf32>
    %438 = vector.shape_cast %430 : vector<2x32xf32> to vector<1x2x32xf32>
    %439 = vector.shape_cast %431 : vector<2x32xf32> to vector<1x2x32xf32>
    %440 = vector.shape_cast %432 : vector<2x32xf32> to vector<1x2x32xf32>
    %441 = vector.shape_cast %433 : vector<2x32xf32> to vector<1x2x32xf32>
    %442 = vector.shape_cast %434 : vector<2x32xf32> to vector<1x2x32xf32>
    %443 = vector.shape_cast %435 : vector<2x32xf32> to vector<1x2x32xf32>
    %444 = vector.shape_cast %436 : vector<2x32xf32> to vector<1x2x32xf32>
    %445 = tpu.concatenate %437, %438, %439, %440, %441, %442, %443, %444 in 0 : vector<1x2x32xf32>, vector<1x2x32xf32>, vector<1x2x32xf32>, vector<1x2x32xf32>, vector<1x2x32xf32>, vector<1x2x32xf32>, vector<1x2x32xf32>, vector<1x2x32xf32> -> vector<8x2x32xf32>
    %c0_53 = arith.constant 0 : index
    %c0_54 = arith.constant 0 : index
    %c0_55 = arith.constant 0 : index
    %446 = vector.load %arg7[%c0_53, %c0_54, %c0_55] : memref<1x1x32xf32, #tpu.memory_space<vmem>>, vector<1x1x32xf32>
    %447 = vector.broadcast %446 : vector<1x1x32xf32> to vector<8x2x32xf32>
    %448 = arith.mulf %445, %447 : vector<8x2x32xf32>
    %cst_56 = arith.constant dense<0.000000e+00> : vector<8x2xf32>
    %449 = vector.multi_reduction <add>, %448, %cst_56 [2] : vector<8x2x32xf32> to vector<8x2xf32>
    %cst_57 = arith.constant dense<0xFF800000> : vector<8xf32>
    %450 = vector.multi_reduction <maximumf>, %449, %cst_57 [1] : vector<8x2xf32> to vector<8xf32>
    %451 = vector.shape_cast %450 : vector<8xf32> to vector<8x1xf32>
    %452 = vector.broadcast %451 : vector<8x1xf32> to vector<8x2xf32>
    %453 = arith.subf %449, %452 : vector<8x2xf32>
    %454 = math.exp %453 : vector<8x2xf32>
    %cst_58 = arith.constant dense<0.000000e+00> : vector<8xf32>
    %455 = vector.multi_reduction <add>, %454, %cst_58 [1] : vector<8x2xf32> to vector<8xf32>
    %456 = vector.shape_cast %455 : vector<8xf32> to vector<8x1xf32>
    %457 = vector.broadcast %456 : vector<8x1xf32> to vector<8x2xf32>
    %458 = arith.divf %454, %457 : vector<8x2xf32>
    %c0_59 = arith.constant 0 : index
    %c0_60 = arith.constant 0 : index
    %459 = vector.load %arg11[%c0_59, %c0_60] : memref<8x2xf32, #tpu.memory_space<vmem>>, vector<8x2xf32>
    tpu.vector_store %arg11[%c0_59, %c0_60], %458 {strides = array<i32>} : memref<8x2xf32, #tpu.memory_space<vmem>>, vector<8x2xf32>,
    %cst_61 = arith.constant 0.000000e+00 : f32
    %460 = vector.broadcast %cst_61 : f32 to vector<1x32xf32>
    %461 = vector.extract_strided_slice %458 {offsets = [0, 0], sizes = [1, 1], strides = [1, 1]} : vector<8x2xf32> to vector<1x1xf32>
    %462 = vector.extract_strided_slice %429 {offsets = [0, 0], sizes = [1, 32], strides = [1, 1]} : vector<2x32xf32> to vector<1x32xf32>
    %463 = vector.broadcast %461 : vector<1x1xf32> to vector<1x32xf32>
    %464 = arith.mulf %463, %462 : vector<1x32xf32>
    %465 = arith.addf %460, %464 : vector<1x32xf32>
    %466 = vector.extract_strided_slice %458 {offsets = [0, 1], sizes = [1, 1], strides = [1, 1]} : vector<8x2xf32> to vector<1x1xf32>
    %467 = vector.extract_strided_slice %429 {offsets = [1, 0], sizes = [1, 32], strides = [1, 1]} : vector<2x32xf32> to vector<1x32xf32>
    %468 = vector.broadcast %466 : vector<1x1xf32> to vector<1x32xf32>
    %469 = arith.mulf %468, %467 : vector<1x32xf32>
    %470 = arith.addf %465, %469 : vector<1x32xf32>
    %471 = vector.extract_strided_slice %458 {offsets = [1, 0], sizes = [1, 1], strides = [1, 1]} : vector<8x2xf32> to vector<1x1xf32>
    %472 = vector.extract_strided_slice %430 {offsets = [0, 0], sizes = [1, 32], strides = [1, 1]} : vector<2x32xf32> to vector<1x32xf32>
    %473 = vector.broadcast %471 : vector<1x1xf32> to vector<1x32xf32>
    %474 = arith.mulf %473, %472 : vector<1x32xf32>
    %475 = arith.addf %470, %474 : vector<1x32xf32>
    %476 = vector.extract_strided_slice %458 {offsets = [1, 1], sizes = [1, 1], strides = [1, 1]} : vector<8x2xf32> to vector<1x1xf32>
    %477 = vector.extract_strided_slice %430 {offsets = [1, 0], sizes = [1, 32], strides = [1, 1]} : vector<2x32xf32> to vector<1x32xf32>
    %478 = vector.broadcast %476 : vector<1x1xf32> to vector<1x32xf32>
    %479 = arith.mulf %478, %477 : vector<1x32xf32>
    %480 = arith.addf %475, %479 : vector<1x32xf32>
    %481 = vector.extract_strided_slice %458 {offsets = [2, 0], sizes = [1, 1], strides = [1, 1]} : vector<8x2xf32> to vector<1x1xf32>
    %482 = vector.extract_strided_slice %431 {offsets = [0, 0], sizes = [1, 32], strides = [1, 1]} : vector<2x32xf32> to vector<1x32xf32>
    %483 = vector.broadcast %481 : vector<1x1xf32> to vector<1x32xf32>
    %484 = arith.mulf %483, %482 : vector<1x32xf32>
    %485 = arith.addf %480, %484 : vector<1x32xf32>
    %486 = vector.extract_strided_slice %458 {offsets = [2, 1], sizes = [1, 1], strides = [1, 1]} : vector<8x2xf32> to vector<1x1xf32>
    %487 = vector.extract_strided_slice %431 {offsets = [1, 0], sizes = [1, 32], strides = [1, 1]} : vector<2x32xf32> to vector<1x32xf32>
    %488 = vector.broadcast %486 : vector<1x1xf32> to vector<1x32xf32>
    %489 = arith.mulf %488, %487 : vector<1x32xf32>
    %490 = arith.addf %485, %489 : vector<1x32xf32>
    %491 = vector.extract_strided_slice %458 {offsets = [3, 0], sizes = [1, 1], strides = [1, 1]} : vector<8x2xf32> to vector<1x1xf32>
    %492 = vector.extract_strided_slice %432 {offsets = [0, 0], sizes = [1, 32], strides = [1, 1]} : vector<2x32xf32> to vector<1x32xf32>
    %493 = vector.broadcast %491 : vector<1x1xf32> to vector<1x32xf32>
    %494 = arith.mulf %493, %492 : vector<1x32xf32>
    %495 = arith.addf %490, %494 : vector<1x32xf32>
    %496 = vector.extract_strided_slice %458 {offsets = [3, 1], sizes = [1, 1], strides = [1, 1]} : vector<8x2xf32> to vector<1x1xf32>
    %497 = vector.extract_strided_slice %432 {offsets = [1, 0], sizes = [1, 32], strides = [1, 1]} : vector<2x32xf32> to vector<1x32xf32>
    %498 = vector.broadcast %496 : vector<1x1xf32> to vector<1x32xf32>
    %499 = arith.mulf %498, %497 : vector<1x32xf32>
    %500 = arith.addf %495, %499 : vector<1x32xf32>
    %cst_62 = arith.constant 0.000000e+00 : f32
    %501 = vector.broadcast %cst_62 : f32 to vector<1x32xf32>
    %502 = vector.extract_strided_slice %458 {offsets = [4, 0], sizes = [1, 1], strides = [1, 1]} : vector<8x2xf32> to vector<1x1xf32>
    %503 = vector.extract_strided_slice %433 {offsets = [0, 0], sizes = [1, 32], strides = [1, 1]} : vector<2x32xf32> to vector<1x32xf32>
    %504 = vector.broadcast %502 : vector<1x1xf32> to vector<1x32xf32>
    %505 = arith.mulf %504, %503 : vector<1x32xf32>
    %506 = arith.addf %501, %505 : vector<1x32xf32>
    %507 = vector.extract_strided_slice %458 {offsets = [4, 1], sizes = [1, 1], strides = [1, 1]} : vector<8x2xf32> to vector<1x1xf32>
    %508 = vector.extract_strided_slice %433 {offsets = [1, 0], sizes = [1, 32], strides = [1, 1]} : vector<2x32xf32> to vector<1x32xf32>
    %509 = vector.broadcast %507 : vector<1x1xf32> to vector<1x32xf32>
    %510 = arith.mulf %509, %508 : vector<1x32xf32>
    %511 = arith.addf %506, %510 : vector<1x32xf32>
    %512 = vector.extract_strided_slice %458 {offsets = [5, 0], sizes = [1, 1], strides = [1, 1]} : vector<8x2xf32> to vector<1x1xf32>
    %513 = vector.extract_strided_slice %434 {offsets = [0, 0], sizes = [1, 32], strides = [1, 1]} : vector<2x32xf32> to vector<1x32xf32>
    %514 = vector.broadcast %512 : vector<1x1xf32> to vector<1x32xf32>
    %515 = arith.mulf %514, %513 : vector<1x32xf32>
    %516 = arith.addf %511, %515 : vector<1x32xf32>
    %517 = vector.extract_strided_slice %458 {offsets = [5, 1], sizes = [1, 1], strides = [1, 1]} : vector<8x2xf32> to vector<1x1xf32>
    %518 = vector.extract_strided_slice %434 {offsets = [1, 0], sizes = [1, 32], strides = [1, 1]} : vector<2x32xf32> to vector<1x32xf32>
    %519 = vector.broadcast %517 : vector<1x1xf32> to vector<1x32xf32>
    %520 = arith.mulf %519, %518 : vector<1x32xf32>
    %521 = arith.addf %516, %520 : vector<1x32xf32>
    %522 = vector.extract_strided_slice %458 {offsets = [6, 0], sizes = [1, 1], strides = [1, 1]} : vector<8x2xf32> to vector<1x1xf32>
    %523 = vector.extract_strided_slice %435 {offsets = [0, 0], sizes = [1, 32], strides = [1, 1]} : vector<2x32xf32> to vector<1x32xf32>
    %524 = vector.broadcast %522 : vector<1x1xf32> to vector<1x32xf32>
    %525 = arith.mulf %524, %523 : vector<1x32xf32>
    %526 = arith.addf %521, %525 : vector<1x32xf32>
    %527 = vector.extract_strided_slice %458 {offsets = [6, 1], sizes = [1, 1], strides = [1, 1]} : vector<8x2xf32> to vector<1x1xf32>
    %528 = vector.extract_strided_slice %435 {offsets = [1, 0], sizes = [1, 32], strides = [1, 1]} : vector<2x32xf32> to vector<1x32xf32>
    %529 = vector.broadcast %527 : vector<1x1xf32> to vector<1x32xf32>
    %530 = arith.mulf %529, %528 : vector<1x32xf32>
    %531 = arith.addf %526, %530 : vector<1x32xf32>
    %532 = vector.extract_strided_slice %458 {offsets = [7, 0], sizes = [1, 1], strides = [1, 1]} : vector<8x2xf32> to vector<1x1xf32>
    %533 = vector.extract_strided_slice %436 {offsets = [0, 0], sizes = [1, 32], strides = [1, 1]} : vector<2x32xf32> to vector<1x32xf32>
    %534 = vector.broadcast %532 : vector<1x1xf32> to vector<1x32xf32>
    %535 = arith.mulf %534, %533 : vector<1x32xf32>
    %536 = arith.addf %531, %535 : vector<1x32xf32>
    %537 = vector.extract_strided_slice %458 {offsets = [7, 1], sizes = [1, 1], strides = [1, 1]} : vector<8x2xf32> to vector<1x1xf32>
    %538 = vector.extract_strided_slice %436 {offsets = [1, 0], sizes = [1, 32], strides = [1, 1]} : vector<2x32xf32> to vector<1x32xf32>
    %539 = vector.broadcast %537 : vector<1x1xf32> to vector<1x32xf32>
    %540 = arith.mulf %539, %538 : vector<1x32xf32>
    %541 = arith.addf %536, %540 : vector<1x32xf32>
    %542 = tpu.concatenate %500, %541 in 0 : vector<1x32xf32>, vector<1x32xf32> -> vector<2x32xf32>
    %543 = vector.extract_strided_slice %217 {offsets = [0, 0], sizes = [2, 16], strides = [1, 1]} : vector<2x32xf32> to vector<2x16xf32>
    %544 = vector.extract_strided_slice %217 {offsets = [0, 16], sizes = [2, 16], strides = [1, 1]} : vector<2x32xf32> to vector<2x16xf32>
    %545 = vector.extract_strided_slice %426 {offsets = [0, 0], sizes = [2, 16], strides = [1, 1]} : vector<2x32xf32> to vector<2x16xf32>
    %546 = vector.extract_strided_slice %426 {offsets = [0, 16], sizes = [2, 16], strides = [1, 1]} : vector<2x32xf32> to vector<2x16xf32>
    %547 = vector.extract_strided_slice %543 {offsets = [0, 0], sizes = [1, 16], strides = [1, 1]} : vector<2x16xf32> to vector<1x16xf32>
    %c0_63 = arith.constant 0 : index
    %c0_64 = arith.constant 0 : index
    %548 = vector.load %arg12[%c0_63, %c0_64] : memref<2x96xf32, #tpu.memory_space<vmem>>, vector<1x16xf32>
    tpu.vector_store %arg12[%c0_63, %c0_64], %547 {strides = array<i32>} : memref<2x96xf32, #tpu.memory_space<vmem>>, vector<1x16xf32>,
    %549 = vector.extract_strided_slice %543 {offsets = [1, 0], sizes = [1, 16], strides = [1, 1]} : vector<2x16xf32> to vector<1x16xf32>
    %c0_65 = arith.constant 0 : index
    %c16 = arith.constant 16 : index
    %550 = vector.load %arg12[%c0_65, %c16] : memref<2x96xf32, #tpu.memory_space<vmem>>, vector<1x16xf32>
    tpu.vector_store %arg12[%c0_65, %c16], %549 {strides = array<i32>} : memref<2x96xf32, #tpu.memory_space<vmem>>, vector<1x16xf32>,
    %551 = vector.extract_strided_slice %544 {offsets = [0, 0], sizes = [1, 16], strides = [1, 1]} : vector<2x16xf32> to vector<1x16xf32>
    %c0_66 = arith.constant 0 : index
    %c32 = arith.constant 32 : index
    %552 = vector.load %arg12[%c0_66, %c32] : memref<2x96xf32, #tpu.memory_space<vmem>>, vector<1x16xf32>
    tpu.vector_store %arg12[%c0_66, %c32], %551 {strides = array<i32>} : memref<2x96xf32, #tpu.memory_space<vmem>>, vector<1x16xf32>,
    %553 = vector.extract_strided_slice %544 {offsets = [1, 0], sizes = [1, 16], strides = [1, 1]} : vector<2x16xf32> to vector<1x16xf32>
    %c0_67 = arith.constant 0 : index
    %c48 = arith.constant 48 : index
    %554 = vector.load %arg12[%c0_67, %c48] : memref<2x96xf32, #tpu.memory_space<vmem>>, vector<1x16xf32>
    tpu.vector_store %arg12[%c0_67, %c48], %553 {strides = array<i32>} : memref<2x96xf32, #tpu.memory_space<vmem>>, vector<1x16xf32>,
    %555 = vector.extract_strided_slice %545 {offsets = [0, 0], sizes = [1, 16], strides = [1, 1]} : vector<2x16xf32> to vector<1x16xf32>
    %c1 = arith.constant 1 : index
    %c0_68 = arith.constant 0 : index
    %556 = vector.load %arg12[%c1, %c0_68] : memref<2x96xf32, #tpu.memory_space<vmem>>, vector<1x16xf32>
    tpu.vector_store %arg12[%c1, %c0_68], %555 {strides = array<i32>} : memref<2x96xf32, #tpu.memory_space<vmem>>, vector<1x16xf32>,
    %557 = vector.extract_strided_slice %545 {offsets = [1, 0], sizes = [1, 16], strides = [1, 1]} : vector<2x16xf32> to vector<1x16xf32>
    %c1_69 = arith.constant 1 : index
    %c16_70 = arith.constant 16 : index
    %558 = vector.load %arg12[%c1_69, %c16_70] : memref<2x96xf32, #tpu.memory_space<vmem>>, vector<1x16xf32>
    tpu.vector_store %arg12[%c1_69, %c16_70], %557 {strides = array<i32>} : memref<2x96xf32, #tpu.memory_space<vmem>>, vector<1x16xf32>,
    %559 = vector.extract_strided_slice %546 {offsets = [0, 0], sizes = [1, 16], strides = [1, 1]} : vector<2x16xf32> to vector<1x16xf32>
    %c1_71 = arith.constant 1 : index
    %c32_72 = arith.constant 32 : index
    %560 = vector.load %arg12[%c1_71, %c32_72] : memref<2x96xf32, #tpu.memory_space<vmem>>, vector<1x16xf32>
    tpu.vector_store %arg12[%c1_71, %c32_72], %559 {strides = array<i32>} : memref<2x96xf32, #tpu.memory_space<vmem>>, vector<1x16xf32>,
    %561 = vector.extract_strided_slice %546 {offsets = [1, 0], sizes = [1, 16], strides = [1, 1]} : vector<2x16xf32> to vector<1x16xf32>
    %c1_73 = arith.constant 1 : index
    %c48_74 = arith.constant 48 : index
    %562 = vector.load %arg12[%c1_73, %c48_74] : memref<2x96xf32, #tpu.memory_space<vmem>>, vector<1x16xf32>
    tpu.vector_store %arg12[%c1_73, %c48_74], %561 {strides = array<i32>} : memref<2x96xf32, #tpu.memory_space<vmem>>, vector<1x16xf32>,
    %c0_75 = arith.constant 0 : index
    %c64 = arith.constant 64 : index
    %563 = vector.load %arg12[%c0_75, %c64] : memref<2x96xf32, #tpu.memory_space<vmem>>, vector<2x32xf32>
    tpu.vector_store %arg12[%c0_75, %c64], %542 {strides = array<i32>} : memref<2x96xf32, #tpu.memory_space<vmem>>, vector<2x32xf32>,
    %c0_76 = arith.constant 0 : index
    %c0_77 = arith.constant 0 : index
    %564 = vector.load %arg12[%c0_76, %c0_77] : memref<2x96xf32, #tpu.memory_space<vmem>>, vector<2x96xf32>
    %c0_78 = arith.constant 0 : index
    %c0_79 = arith.constant 0 : index
    %565 = vector.load %arg8[%c0_78, %c0_79] : memref<96x3xf32, #tpu.memory_space<vmem>>, vector<96x3xf32>
    %cst_80 = arith.constant dense<0.000000e+00> : vector<2x3xf32>
    %566 = tpu.matmul %564, %565, %cst_80 {dimension_numbers = #tpu.dot_dimension_numbers<[1], [0], [0], [1], [0, 0, 1, 1], [], []>} : vector<2x96xf32>, vector<96x3xf32>, vector<2x3xf32> -> vector<2x3xf32>
    %c0_81 = arith.constant 0 : index
    %c0_82 = arith.constant 0 : index
    %567 = vector.load %arg9[%c0_81, %c0_82] : memref<1x3xf32, #tpu.memory_space<vmem>>, vector<1x3xf32>
    %568 = vector.broadcast %567 : vector<1x3xf32> to vector<2x3xf32>
    %569 = arith.addf %566, %568 : vector<2x3xf32>
    %570 = arith.negf %569 : vector<2x3xf32>
    %571 = math.exp %570 : vector<2x3xf32>
    %cst_83 = arith.constant 1.000000e+00 : f32
    %572 = vector.broadcast %cst_83 : f32 to vector<2x3xf32>
    %573 = arith.addf %572, %571 : vector<2x3xf32>
    %574 = arith.divf %572, %573 : vector<2x3xf32>
    %c0_84 = arith.constant 0 : index
    %c0_85 = arith.constant 0 : index
    %575 = vector.load %arg10[%c0_84, %c0_85] : memref<2x3xf32, #tpu.memory_space<vmem>>, vector<2x3xf32>
    tpu.vector_store %arg10[%c0_84, %c0_85], %574 {strides = array<i32>} : memref<2x3xf32, #tpu.memory_space<vmem>>, vector<2x3xf32>,
    return
  }
}

</mosaic_0001>

<bundles_post_ra>
// kernel: tpu_custom_call.1
= control target key start
LH: loop header
LB: loop body
LE: loop exit
PB: predicated region body
PF: predicated region fallthrough
CT: control target
= control target key end

     0   :  { %vm70_vm0 = vcmask 1043456   ;;  %vm63_vm1 = vcmask 31744   ;;  %v3241_v2 = vmov 0.0   ;;  %s4061_s0 = inlined_call_operand.vmem [shape: f32[16,4], index: 0, kind: input, shape index: {}]   ;;  %s4062_s1 = inlined_call_operand.vmem [shape: f32[4,128], index: 1, kind: input, shape index: {}]   ;;  %s4063_s2 = inlined_call_operand.vmem [shape: f32[32,128], index: 2, kind: input, shape index: {}]   ;;  %s4064_s3 = inlined_call_operand.vmem [shape: f32[1,128], index: 3, kind: input, shape index: {}]   ;;  %s4065_s4 = inlined_call_operand.vmem [shape: f32[32,128], index: 4, kind: input, shape index: {}]   ;;  %s4066_s5 = inlined_call_operand.vmem [shape: f32[32,128], index: 5, kind: input, shape index: {}]   ;;  %s4067_s6 = inlined_call_operand.vmem [shape: f32[1,128], index: 6, kind: input, shape index: {}]   ;;  %s4068_s7 = inlined_call_operand.vmem [shape: f32[1,1,32], index: 7, kind: input, shape index: {}]   ;;  %s4069_s8 = inlined_call_operand.vmem [shape: f32[96,3], index: 8, kind: input, shape index: {}]   ;;  %s4070_s9 = inlined_call_operand.vmem [shape: f32[1,3], index: 9, kind: input, shape index: {}]   ;;  %s4071_s10 = inlined_call_operand.hbm [shape: f32[2,3], index: 10, kind: output, shape index: {0}]   ;;  %s4072_s11 = inlined_call_operand.vmem [shape: f32[8,2], index: 11, kind: output, shape index: {1}]  }
   0x1   :  { %v55_v0 = vld [vmem:[%s4062_s1] sm:$0xf]  ;;  %2832 = vmatprep.subr.mxu1 %v3241_v2  ;;  %v3319_v3 = vld [vmem:[%s4063_s2 + $0x18] sm:$0xff]  ;;  %v54_v4 = vld [vmem:[%s4061_s0 + $0x8] sm:$0xff] }
   0x2   :  { %v53_v1 = vld [vmem:[%s4061_s0] sm:$0xff]  ;;  %2827 = vmatprep.subr.msk.mxu0 %vm70_vm0, %v55_v0  ;;  %v3328_v5 = vld [vmem:[%s4063_s2 + $0x10] sm:$0xff] }
   0x3   :  { %2828 = vmatpush3.msk.msra.mxu0 %vm70_vm0, %v55_v0  ;;  %2829 = vmatprep.mubr.msk.f32.mxu0 %vm63_vm1, %v53_v1 }
   0x4   :  { %17 = vsyncpa [#allocation4], 0  ;;  %2833 = vmatpush3.msra.mxu1 %v3319_v3  ;;  %2830 = vmatmul.mubr.msk.f32.vlgmr.msra.gmra.mxu0 %vm63_vm1, %v54_v4  ;;  %v3335_v6 = vld [vmem:[%s4063_s2 + $0x8] sm:$0xff]  ;;  %vm3242_vm2 = vmmov 0   ;;  %v3345_v7 = vld [vmem:[%s4063_s2] sm:$0xff]  ;;  %v38_v8 = vlaneseq  ;;  %s3244_s30 = smov 32  }
   0x5   :  { %2834 = vmatprep.subr.mxu1 %v3241_v2  ;;  %2840 = vmatprep.mubr.msk.f32.mxu1 %vm3242_vm2, %v3241_v2  ;;  %v2684_v10 = vld [vmem:[%s4064_s3] ss:$0 sm:$0xff]  ;;  %s3243_s3 = smov 64   ;;  %vm159_vm4 = vcmask 261120   ;;  %vm2534_vm5 = vcmask 129030   ;;  %vm1018_vm6 = vcmask 130048  }
   0x6   :  { %2835 = vmatpush3.msra.mxu1 %v3328_v5  ;;  %2865 = vmatprep.subr.mxu0 %v3241_v2  ;;  %v3373_v9 = vand.u32 127, %v38_v8  ;;  %vm1071_vm7 = vcmask 1041408   ;;  %vm1074_vm8 = vcmask 1045504   ;;  %vm2119_vm9 = vcmask 254976  }
   0x7   :  { %2836 = vmatprep.subr.mxu1 %v3241_v2  ;;  %2866 = vmatpush3.msra.mxu0 %v3319_v3  ;;  %vm2184_vm10 = vcmask 1041409   ;;  %vm2186_vm11 = vcmask 1042434   ;;  %vm2188_vm12 = vcmask 1043459   ;;  %vm2190_vm13 = vcmask 1044484  }
   0x8   :  { %2837 = vmatpush3.msra.mxu1 %v3335_v6  ;;  %2867 = vmatprep.subr.mxu0 %v3241_v2  ;;  %v44_v11 = vand.u32 31, %v3373_v9  ;;  %vm2192_vm14 = vcmask 1045509   ;;  %vm2194_vm15 = vcmask 1046534   ;;  %vm2199_vm1 = vcmask 15360  }
   0x9   :  { %2838 = vmatprep.subr.mxu1 %v3241_v2  ;;  %2868 = vmatpush3.msra.mxu0 %v3328_v5 }
   0xa   :  { %2839 = vmatpush3.msra.mxu1 %v3345_v7  ;;  %2869 = vmatprep.subr.mxu0 %v3241_v2  ;;  %vm3379_vm3 = vcmp.lt.s32.totalorder %v44_v11, 16 }
   0xb   :  { %2841 = vmatmul.mubr.f32.vlgmr.msra.gmra.mxu1 %v3241_v2  ;;  %2843 = vmatprep.subr.mxu1 %v3241_v2 }
   0xc   :  { %2844 = vmatpush3.msra.mxu1 %v3319_v3  ;;  %2851 = vmatprep.mubr.msk.f32.mxu1 %vm3242_vm2, %v3241_v2 }
   0xd   :  { %2845 = vmatprep.subr.mxu1 %v3241_v2  ;;  %2870 = vmatpush3.msra.mxu0 %v3335_v6 }
   0xe   :  { %2846 = vmatpush3.msra.mxu1 %v3328_v5  ;;  %2871 = vmatprep.subr.mxu0 %v3241_v2 }
   0xf   :  { %2847 = vmatprep.subr.mxu1 %v3241_v2  ;;  %2872 = vmatpush3.msra.mxu0 %v3345_v7 }
  0x10   :  { %2848 = vmatpush3.msra.mxu1 %v3335_v6  ;;  %2873 = vmatprep.mubr.msk.f32.mxu0 %vm3242_vm2, %v3241_v2 }
  0x11   :  { %2849 = vmatprep.subr.mxu1 %v3241_v2  ;;  %2887 = vmatprep.subr.mxu0 %v3241_v2 }
  0x12   :  { %2850 = vmatpush3.msra.mxu1 %v3345_v7 }
  0x13   :  { %2854 = vmatprep.subr.mxu1 %v3241_v2 }
  0xc4   :  { %v2831_v12 = vpop.f32.mrf.mxu0 }
  0xc5   :  { %v146_v13 = vadd.f32 %v2831_v12, %v2684_v10 }
  0xc6   :  { %v140_v14 = vpop.f32.mrf.mxu0 }
  0xc7   :  { %v141_v16 = vadd.f32 %v2684_v10, %v140_v14  ;;  %v156_v17 = vrot.slane %v146_v13, 6  ;;  %v258_v18 = vrot.slane %v146_v13, 2 }
  0xc9   :  { %v3385_v19 = vsel %vm3379_vm3, %v141_v16, %v156_v17  ;;  %v3389_v20 = vsel %vm3379_vm3, %v141_v16, %v258_v18  ;;  %v582_v21 = vrot.slane %v141_v16, 6  ;;  %v689_v22 = vrot.slane %v141_v16, 2 }
  0xcb   :  { %v229_v23 = vpop.f32.mrf.mxu1  ;;  %v3393_v24 = vsel %vm3379_vm3, %v146_v13, %v582_v21  ;;  %v3397_v25 = vsel %vm3379_vm3, %v146_v13, %v689_v22 }
  0xcc   :  { %v233_v26 = vadd.f32 %v229_v23, %v3385_v19 }
  0xcd   :  { %v2842_v27 = vpop.f32.mrf.mxu1 }
  0xce   :  { %3055 = vtanh.f32 %v233_v26  ;;  %v2688_v29 = vmul.f32 -1.442695, %v233_v26 }
  0xd0   :  { %3057 = vpow2.f32 %v2688_v29 }
  0xdb   :  { %v3056_v28 = vpop.eup %3055 }
  0xdc   :  { %243 = vrot.lane.b32.xlu0 %v3056_v28, %s3243_s3 }
  0xdd   :  { %v3058_v30 = vpop.eup %3057 }
  0xde   :  { %v237_v31 = vadd.f32 1.0, %v3058_v30 }
  0xe0   :  { %3059 = vrcp.f32 %v237_v31 }
  0xed   :  { %v3060_v32 = vpop.eup %3059 }
  0xee   :  { %v241_v35 = vmul.f32 0.0, %v3060_v32 }
 0x14e   :  { %v244_v33 = vpop.permute.xlu0 %243 }
 0x14f   :  { %v246_v34 = vmul.f32 %v3060_v32, %v244_v33 }
 0x151   :  { %248 = vrot.lane.b32.xlu0 %v246_v34, %s3244_s30 }
 0x1c3   :  { %v249_v36 = vpop.permute.xlu0 %248 }
 0x1c4   :  { %v251_v37 = vadd.f32 %v249_v36, %v241_v35 }
 0x1c6   :  { %3061 = vtanh.f32 %v251_v37  ;;  %v348_v53 = vrot.slane %v251_v37, 6 }
 0x1d3   :  { %v3062_v38 = vpop.eup %3061 }
 0x1d4   :  { %254 = vrot.lane.b32.xlu1 %v3062_v38, %s3243_s3 }
 0x246   :  { %v255_v39 = vpop.permute.xlu1 %254 }
 0x247   :  { %v3403_v40 = vmul.f32 %v3060_v32, %v255_v39 }
 0x249   :  { %262 = vrot.lane.b32.xlu1 %v3403_v40, %s3244_s30 }
 0x2bb   :  { %v3407_v41 = vpop.permute.xlu1 %262 }
 0x2bc   :  { %2852 = vmatmul.mubr.msk.f32.vlgmr.msra.gmra.mxu1 %vm159_vm4, %v3407_v41 }
 0x2bd   :  { %2855 = vmatpush3.msra.mxu1 %v3319_v3  ;;  %2862 = vmatprep.mubr.msk.f32.mxu1 %vm3242_vm2, %v3241_v2 }
 0x2be   :  { %2856 = vmatprep.subr.mxu1 %v3241_v2 }
 0x2bf   :  { %2857 = vmatpush3.msra.mxu1 %v3328_v5 }
 0x2c0   :  { %2858 = vmatprep.subr.mxu1 %v3241_v2 }
 0x2c1   :  { %2859 = vmatpush3.msra.mxu1 %v3335_v6 }
 0x2c2   :  { %2860 = vmatprep.subr.mxu1 %v3241_v2 }
 0x2c3   :  { %2861 = vmatpush3.msra.mxu1 %v3345_v7 }
 0x2c4   :  { %2876 = vmatprep.subr.mxu1 %v3241_v2 }
 0x37c   :  { %v332_v42 = vpop.f32.mrf.mxu1 }
 0x37d   :  { %v337_v43 = vrot.slane %v332_v42, 6 }
 0x37e   :  { %v2853_v44 = vpop.f32.mrf.mxu1 }
 0x37f   :  { %v339_v45 = vadd.f32 %v337_v43, %v3389_v20 }
 0x381   :  { %3063 = vtanh.f32 %v339_v45  ;;  %v2690_v47 = vmul.f32 -1.442695, %v339_v45 }
 0x383   :  { %3065 = vpow2.f32 %v2690_v47 }
 0x38e   :  { %v3064_v46 = vpop.eup %3063 }
 0x38f   :  { %352 = vrot.lane.b32.xlu0 %v3064_v46, %s3243_s3 }
 0x390   :  { %v3066_v48 = vpop.eup %3065 }
 0x391   :  { %v343_v49 = vadd.f32 1.0, %v3066_v48 }
 0x393   :  { %3067 = vrcp.f32 %v343_v49 }
 0x3a0   :  { %v3068_v50 = vpop.eup %3067 }
 0x3a1   :  { %v350_v54 = vmul.f32 %v3068_v50, %v348_v53 }
 0x401   :  { %v353_v51 = vpop.permute.xlu0 %352 }
 0x402   :  { %v355_v52 = vmul.f32 %v3068_v50, %v353_v51 }
 0x404   :  { %357 = vrot.lane.b32.xlu1 %v355_v52, %s3244_s30 }
 0x476   :  { %v358_v55 = vpop.permute.xlu1 %357 }
 0x477   :  { %v360_v56 = vadd.f32 %v358_v55, %v350_v54 }
 0x479   :  { %3069 = vtanh.f32 %v360_v56  ;;  %v455_v17 = vrot.slane %v360_v56, 6 }
 0x486   :  { %v3070_v57 = vpop.eup %3069 }
 0x487   :  { %363 = vrot.lane.b32.xlu0 %v3070_v57, %s3243_s3 }
 0x4f9   :  { %v364_v58 = vpop.permute.xlu0 %363 }
 0x4fa   :  { %v3425_v59 = vmul.f32 %v3068_v50, %v364_v58 }
 0x4fc   :  { %v368_v60 = vrot.slane %v3425_v59, 2 }
 0x4fe   :  { %369 = vrot.lane.b32.xlu1 %v368_v60, %s3244_s30 }
 0x570   :  { %v370_v61 = vpop.permute.xlu1 %369 }
 0x571   :  { %2863 = vmatmul.mubr.msk.f32.vlgmr.msra.gmra.mxu1 %vm159_vm4, %v370_v61 }
 0x572   :  { %2877 = vmatpush3.msra.mxu1 %v3319_v3  ;;  %2884 = vmatprep.mubr.msk.f32.mxu1 %vm3242_vm2, %v3241_v2 }
 0x573   :  { %2878 = vmatprep.subr.mxu1 %v3241_v2 }
 0x574   :  { %2879 = vmatpush3.msra.mxu1 %v3328_v5 }
 0x575   :  { %2880 = vmatprep.subr.mxu1 %v3241_v2 }
 0x576   :  { %2881 = vmatpush3.msra.mxu1 %v3335_v6 }
 0x577   :  { %2882 = vmatprep.subr.mxu1 %v3241_v2 }
 0x578   :  { %2883 = vmatpush3.msra.mxu1 %v3345_v7 }
 0x579   :  { %2898 = vmatprep.subr.mxu1 %v3241_v2 }
 0x631   :  { %v439_v62 = vpop.f32.mrf.mxu1 }
 0x632   :  { %v444_v63 = vrot.slane %v439_v62, 4 }
 0x633   :  { %v2864_v0 = vpop.f32.mrf.mxu1 }
 0x634   :  { %v446_v1 = vadd.f32 %v444_v63, %v3385_v19 }
 0x636   :  { %3071 = vtanh.f32 %v446_v1  ;;  %v2692_v10 = vmul.f32 -1.442695, %v446_v1 }
 0x638   :  { %3073 = vpow2.f32 %v2692_v10 }
 0x643   :  { %v3072_v4 = vpop.eup %3071 }
 0x644   :  { %459 = vrot.lane.b32.xlu0 %v3072_v4, %s3243_s3 }
 0x645   :  { %v3074_v11 = vpop.eup %3073 }
 0x646   :  { %v450_v12 = vadd.f32 1.0, %v3074_v11 }
 0x648   :  { %3075 = vrcp.f32 %v450_v12 }
 0x655   :  { %v3076_v13 = vpop.eup %3075 }
 0x656   :  { %v457_v18 = vmul.f32 %v3076_v13, %v455_v17 }
 0x6b6   :  { %v460_v14 = vpop.permute.xlu0 %459 }
 0x6b7   :  { %v462_v16 = vmul.f32 %v3076_v13, %v460_v14 }
 0x6b9   :  { %464 = vrot.lane.b32.xlu1 %v462_v16, %s3244_s30 }
 0x72b   :  { %v465_v21 = vpop.permute.xlu1 %464 }
 0x72c   :  { %v467_v22 = vadd.f32 %v465_v21, %v457_v18 }
 0x72e   :  { %3077 = vtanh.f32 %v467_v22  ;;  %v562_v42 = vrot.slane %v467_v22, 6 }
 0x73b   :  { %v3078_v19 = vpop.eup %3077 }
 0x73c   :  { %470 = vrot.lane.b32.xlu0 %v3078_v19, %s3243_s3 }
 0x7ae   :  { %v471_v23 = vpop.permute.xlu0 %470 }
 0x7af   :  { %v3444_v26 = vmul.f32 %v3076_v13, %v471_v23 }
 0x7b1   :  { %v475_v27 = vrot.slane %v3444_v26, 4 }
 0x7b3   :  { %476 = vrot.lane.b32.xlu1 %v475_v27, %s3244_s30 }
 0x825   :  { %v477_v28 = vpop.permute.xlu1 %476 }
 0x826   :  { %2874 = vmatmul.mubr.msk.f32.vlgmr.msra.gmra.mxu0 %vm159_vm4, %v477_v28 }
 0x827   :  { %2888 = vmatpush3.msra.mxu0 %v3319_v3  ;;  %2895 = vmatprep.mubr.msk.f32.mxu0 %vm3242_vm2, %v3241_v2 }
 0x828   :  { %2889 = vmatprep.subr.mxu0 %v3241_v2 }
 0x829   :  { %2890 = vmatpush3.msra.mxu0 %v3328_v5 }
 0x82a   :  { %2891 = vmatprep.subr.mxu0 %v3241_v2 }
 0x82b   :  { %2892 = vmatpush3.msra.mxu0 %v3335_v6 }
 0x82c   :  { %2893 = vmatprep.subr.mxu0 %v3241_v2 }
 0x82d   :  { %2894 = vmatpush3.msra.mxu0 %v3345_v7 }
 0x82e   :  { %2909 = vmatprep.subr.mxu0 %v3241_v2 }
 0x8e6   :  { %v546_v29 = vpop.f32.mrf.mxu0 }
 0x8e7   :  { %v551_v30 = vrot.slane %v546_v29, 2 }
 0x8e8   :  { %v2875_v31 = vpop.f32.mrf.mxu0 }
 0x8e9   :  { %v553_v32 = vadd.f32 %v551_v30, %v3389_v20 }
 0x8eb   :  { %3079 = vtanh.f32 %v553_v32  ;;  %v2694_v34 = vmul.f32 -1.442695, %v553_v32 }
 0x8ed   :  { %3081 = vpow2.f32 %v2694_v34 }
 0x8f8   :  { %v3080_v33 = vpop.eup %3079 }
 0x8f9   :  { %566 = vrot.lane.b32.xlu0 %v3080_v33, %s3243_s3 }
 0x8fa   :  { %v3082_v35 = vpop.eup %3081 }
 0x8fb   :  { %v557_v36 = vadd.f32 1.0, %v3082_v35 }
 0x8fd   :  { %3083 = vrcp.f32 %v557_v36 }
 0x90a   :  { %v3084_v37 = vpop.eup %3083 }
 0x90b   :  { %v564_v43 = vmul.f32 %v3084_v37, %v562_v42 }
 0x96b   :  { %v567_v38 = vpop.permute.xlu0 %566 }
 0x96c   :  { %v569_v39 = vmul.f32 %v3084_v37, %v567_v38 }
 0x96e   :  { %571 = vrot.lane.b32.xlu1 %v569_v39, %s3244_s30 }
 0x9e0   :  { %v572_v44 = vpop.permute.xlu1 %571 }
 0x9e1   :  { %v574_v45 = vadd.f32 %v572_v44, %v564_v43 }
 0x9e3   :  { %3085 = vtanh.f32 %v574_v45  ;;  %v670_v61 = vrot.slane %v574_v45, 6 }
 0x9f0   :  { %v3086_v20 = vpop.eup %3085 }
 0x9f1   :  { %577 = vrot.lane.b32.xlu0 %v3086_v20, %s3243_s3 }
 0xa63   :  { %v578_v46 = vpop.permute.xlu0 %577 }
 0xa64   :  { %v3463_v47 = vmul.f32 %v3084_v37, %v578_v46 }
 0xa66   :  { %v586_v48 = vrot.slane %v3463_v47, 6 }
 0xa68   :  { %587 = vrot.lane.b32.xlu1 %v586_v48, %s3244_s30 }
 0xada   :  { %v3467_v49 = vpop.permute.xlu1 %587 }
 0xadb   :  { %2885 = vmatmul.mubr.msk.f32.vlgmr.msra.gmra.mxu1 %vm159_vm4, %v3467_v49 }
 0xadc   :  { %2899 = vmatpush3.msra.mxu1 %v3319_v3  ;;  %2906 = vmatprep.mubr.msk.f32.mxu1 %vm3242_vm2, %v3241_v2 }
 0xadd   :  { %2900 = vmatprep.subr.mxu1 %v3241_v2 }
 0xade   :  { %2901 = vmatpush3.msra.mxu1 %v3328_v5 }
 0xadf   :  { %2902 = vmatprep.subr.mxu1 %v3241_v2 }
 0xae0   :  { %2903 = vmatpush3.msra.mxu1 %v3335_v6 }
 0xae1   :  { %2904 = vmatprep.subr.mxu1 %v3241_v2 }
 0xae2   :  { %2905 = vmatpush3.msra.mxu1 %v3345_v7 }
 0xb9b   :  { %v657_v50 = vpop.f32.mrf.mxu1 }
 0xb9c   :  { %v661_v51 = vadd.f32 %v657_v50, %v3393_v24 }
 0xb9d   :  { %v2886_v52 = vpop.f32.mrf.mxu1 }
 0xb9e   :  { %3087 = vtanh.f32 %v661_v51  ;;  %v2696_v54 = vmul.f32 -1.442695, %v661_v51 }
 0xba0   :  { %3089 = vpow2.f32 %v2696_v54 }
 0xbab   :  { %v3088_v53 = vpop.eup %3087 }
 0xbac   :  { %674 = vrot.lane.b32.xlu0 %v3088_v53, %s3243_s3 }
 0xbad   :  { %v3090_v55 = vpop.eup %3089 }
 0xbae   :  { %v665_v56 = vadd.f32 1.0, %v3090_v55 }
 0xbb0   :  { %3091 = vrcp.f32 %v665_v56 }
 0xbbd   :  { %v3092_v57 = vpop.eup %3091 }
 0xbbe   :  { %v672_v62 = vmul.f32 %v3092_v57, %v670_v61 }
 0xc1e   :  { %v675_v58 = vpop.permute.xlu0 %674 }
 0xc1f   :  { %v677_v60 = vmul.f32 %v3092_v57, %v675_v58 }
 0xc21   :  { %679 = vrot.lane.b32.xlu1 %v677_v60, %s3244_s30 }
 0xc93   :  { %v680_v63 = vpop.permute.xlu1 %679 }
 0xc94   :  { %v682_v0 = vadd.f32 %v680_v63, %v672_v62 }
 0xc96   :  { %3093 = vtanh.f32 %v682_v0 }
 0xca3   :  { %v3094_v1 = vpop.eup %3093 }
 0xca4   :  { %685 = vrot.lane.b32.xlu0 %v3094_v1, %s3243_s3 }
 0xd16   :  { %v686_v4 = vpop.permute.xlu0 %685 }
 0xd17   :  { %v3484_v10 = vmul.f32 %v3092_v57, %v686_v4 }
 0xd19   :  { %693 = vrot.lane.b32.xlu1 %v3484_v10, %s3244_s30 }
 0xd8b   :  { %v3488_v11 = vpop.permute.xlu1 %693 }
 0xd8c   :  { %2896 = vmatmul.mubr.msk.f32.vlgmr.msra.gmra.mxu0 %vm159_vm4, %v3488_v11 }
 0xd8d   :  { %2910 = vmatpush3.msra.mxu0 %v3319_v3  ;;  %2917 = vmatprep.mubr.msk.f32.mxu0 %vm3242_vm2, %v3241_v2 }
 0xd8e   :  { %2911 = vmatprep.subr.mxu0 %v3241_v2 }
 0xd8f   :  { %2912 = vmatpush3.msra.mxu0 %v3328_v5 }
 0xd90   :  { %2913 = vmatprep.subr.mxu0 %v3241_v2 }
 0xd91   :  { %2914 = vmatpush3.msra.mxu0 %v3335_v6 }
 0xd92   :  { %2915 = vmatprep.subr.mxu0 %v3241_v2 }
 0xd93   :  { %2916 = vmatpush3.msra.mxu0 %v3345_v7  ;;  %v779_v7 = vrot.slane %v682_v0, 6 }
 0xd94   :  { %2931 = vmatprep.subr.mxu0 %v3241_v2 }
 0xe4c   :  { %v763_v12 = vpop.f32.mrf.mxu0 }
 0xe4d   :  { %v768_v13 = vrot.slane %v763_v12, 6 }
 0xe4e   :  { %v2897_v3 = vpop.f32.mrf.mxu0 }
 0xe4f   :  { %v770_v14 = vadd.f32 %v768_v13, %v3397_v25  ;;  %v1039_v3 = vrot.slane %v3484_v10, 2  ;;  %v1082_v10 = vld [vmem:[%s4065_s4 + $0x18] sm:$0xff] }
 0xe50   :  { %2920 = vmatprep.subr.mxu1 %v1082_v10 }
 0xe51   :  { %3095 = vtanh.f32 %v770_v14  ;;  %v2698_v5 = vmul.f32 -1.442695, %v770_v14  ;;  %v1058_v14 = vrot.slane %v3425_v59, 6 }
 0xe53   :  { %3097 = vpow2.f32 %v2698_v5 }
 0xe5e   :  { %v3096_v16 = vpop.eup %3095 }
 0xe5f   :  { %783 = vrot.lane.b32.xlu0 %v3096_v16, %s3243_s3 }
 0xe60   :  { %v3098_v17 = vpop.eup %3097 }
 0xe61   :  { %v774_v18 = vadd.f32 1.0, %v3098_v17 }
 0xe63   :  { %3099 = vrcp.f32 %v774_v18 }
 0xe70   :  { %v3100_v6 = vpop.eup %3099 }
 0xe71   :  { %v781_v19 = vmul.f32 %v3100_v6, %v779_v7  ;;  %v3570_v7 = vld [vmem:[%s4066_s5 + $0x8] sm:$0xff] }
 0xed1   :  { %v784_v21 = vpop.permute.xlu0 %783 }
 0xed2   :  { %v786_v22 = vmul.f32 %v3100_v6, %v784_v21  ;;  %v1079_v21 = vld [vmem:[%s4065_s4] sm:$0xff] }
 0xed4   :  { %788 = vrot.lane.b32.xlu1 %v786_v22, %s3244_s30  ;;  %v3563_v22 = vld [vmem:[%s4066_s5 + $0x10] sm:$0xff] }
 0xf46   :  { %v789_v23 = vpop.permute.xlu1 %788 }
 0xf47   :  { %v791_v27 = vadd.f32 %v789_v23, %v781_v19  ;;  %v3576_v19 = vld [vmem:[%s4066_s5] sm:$0xff] }
 0xf49   :  { %3101 = vtanh.f32 %v791_v27  ;;  %v886_v20 = vrot.slane %v791_v27, 6 }
 0xf56   :  { %v3102_v28 = vpop.eup %3101 }
 0xf57   :  { %794 = vrot.lane.b32.xlu0 %v3102_v28, %s3243_s3 }
 0xfc9   :  { %v795_v29 = vpop.permute.xlu0 %794 }
 0xfca   :  { %v3506_v30 = vmul.f32 %v3100_v6, %v795_v29  ;;  %v1066_v29 = vrot.slane %v3403_v40, 2 }
 0xfcc   :  { %v799_v31 = vrot.slane %v3506_v30, 2  ;;  %v1031_v13 = vrot.slane %v3506_v30, 6 }
 0xfce   :  { %800 = vrot.lane.b32.xlu1 %v799_v31, %s3244_s30 }
0x1040   :  { %v801_v32 = vpop.permute.xlu1 %800 }
0x1041   :  { %2907 = vmatmul.mubr.msk.f32.vlgmr.msra.gmra.mxu1 %vm159_vm4, %v801_v32 }
0x1042   :  { %2921 = vmatpush3.msra.mxu1 %v1082_v10 }
0x1101   :  { %v870_v33 = vpop.f32.mrf.mxu1 }
0x1102   :  { %v875_v34 = vrot.slane %v870_v33, 4 }
0x1103   :  { %v2908_v35 = vpop.f32.mrf.mxu1 }
0x1104   :  { %v877_v36 = vadd.f32 %v875_v34, %v3393_v24 }
0x1106   :  { %3103 = vtanh.f32 %v877_v36  ;;  %v2700_v38 = vmul.f32 -1.442695, %v877_v36 }
0x1108   :  { %3105 = vpow2.f32 %v2700_v38 }
0x1113   :  { %v3104_v37 = vpop.eup %3103 }
0x1114   :  { %890 = vrot.lane.b32.xlu0 %v3104_v37, %s3243_s3 }
0x1115   :  { %v3106_v39 = vpop.eup %3105 }
0x1116   :  { %v881_v42 = vadd.f32 1.0, %v3106_v39 }
0x1118   :  { %3107 = vrcp.f32 %v881_v42 }
0x1125   :  { %v3108_v43 = vpop.eup %3107 }
0x1126   :  { %v888_v46 = vmul.f32 %v3108_v43, %v886_v20 }
0x1186   :  { %v891_v44 = vpop.permute.xlu0 %890 }
0x1187   :  { %v893_v45 = vmul.f32 %v3108_v43, %v891_v44 }
0x1189   :  { %895 = vrot.lane.b32.xlu1 %v893_v45, %s3244_s30 }
0x11fb   :  { %v896_v48 = vpop.permute.xlu1 %895 }
0x11fc   :  { %v898_v50 = vadd.f32 %v896_v48, %v888_v46 }
0x11fe   :  { %3109 = vtanh.f32 %v898_v50  ;;  %v993_v16 = vrot.slane %v898_v50, 6  ;;  %v1046_v50 = vsel %vm1018_vm6, %v3488_v11, %v3467_v49 }
0x120b   :  { %v3110_v24 = vpop.eup %3109 }
0x120c   :  { %901 = vrot.lane.b32.xlu0 %v3110_v24, %s3243_s3 }
0x127e   :  { %v902_v51 = vpop.permute.xlu0 %901 }
0x127f   :  { %v904_v52 = vmul.f32 %v3108_v43, %v902_v51 }
0x1281   :  { %v906_v53 = vrot.slane %v904_v52, 4  ;;  %v1023_v12 = vrot.slane %v904_v52, 2 }
0x1283   :  { %907 = vrot.lane.b32.xlu1 %v906_v53, %s3244_s30 }
0x12f5   :  { %v908_v54 = vpop.permute.xlu1 %907 }
0x12f6   :  { %2918 = vmatmul.mubr.msk.f32.vlgmr.msra.gmra.mxu0 %vm159_vm4, %v908_v54 }
0x12f7   :  { %2939 = vmatprep.mubr.msk.f32.mxu0 %vm3242_vm2, %v3241_v2 }
0x13b6   :  { %v977_v55 = vpop.f32.mrf.mxu0 }
0x13b7   :  { %v982_v56 = vrot.slane %v977_v55, 2 }
0x13b8   :  { %v2919_v57 = vpop.f32.mrf.mxu0 }
0x13b9   :  { %v984_v58 = vadd.f32 %v982_v56, %v3397_v25  ;;  %v1050_v25 = vrot.slane %v3444_v26, 2  ;;  %v2703_v57 = vld [vmem:[%s4067_s6] ss:$0 sm:$0xff] }
0x13bb   :  { %3111 = vtanh.f32 %v984_v58  ;;  %v2702_v61 = vmul.f32 -1.442695, %v984_v58 }
0x13bd   :  { %3113 = vpow2.f32 %v2702_v61 }
0x13c8   :  { %v3112_v60 = vpop.eup %3111 }
0x13c9   :  { %997 = vrot.lane.b32.xlu0 %v3112_v60, %s3243_s3 }
0x13ca   :  { %v3114_v62 = vpop.eup %3113 }
0x13cb   :  { %v988_v63 = vadd.f32 1.0, %v3114_v62 }
0x13cd   :  { %3115 = vrcp.f32 %v988_v63 }
0x13da   :  { %v3116_v0 = vpop.eup %3115 }
0x13db   :  { %v995_v5 = vmul.f32 %v3116_v0, %v993_v16 }
0x143b   :  { %v998_v1 = vpop.permute.xlu0 %997 }
0x143c   :  { %v1000_v4 = vmul.f32 %v3116_v0, %v998_v1 }
0x143e   :  { %1002 = vrot.lane.b32.xlu1 %v1000_v4, %s3244_s30 }
0x1442   :  { %1024 = vrot.lane.b32.xlu1 %v1023_v12, %s3244_s30 }
0x1446   :  { %1032 = vrot.lane.b32.xlu1 %v1031_v13, %s3244_s30 }
0x144a   :  { %1051 = vrot.lane.b32.xlu1 %v1050_v25, %s3244_s30 }
0x144e   :  { %1040 = vrot.lane.b32.xlu1 %v1039_v3, %s3244_s30 }
0x1452   :  { %1059 = vrot.lane.b32.xlu1 %v1058_v14, %s3244_s30 }
0x14b0   :  { %v1003_v17 = vpop.permute.xlu1 %1002 }
0x14b1   :  { %v1005_v18 = vadd.f32 %v1003_v17, %v995_v5 }
0x14b3   :  { %3117 = vtanh.f32 %v1005_v18 }
0x14b4   :  { %v1025_v31 = vpop.permute.xlu1 %1024 }
0x14b8   :  { %v1033_v33 = vpop.permute.xlu1 %1032 }
0x14bc   :  { %v1052_v35 = vpop.permute.xlu1 %1051 }
0x14c0   :  { %v3118_v6 = vpop.eup %3117  ;;  %v1041_v37 = vpop.permute.xlu1 %1040 }
0x14c1   :  { %1008 = vrot.lane.b32.xlu0 %v3118_v6, %s3243_s3 }
0x14c4   :  { %v1060_v39 = vpop.permute.xlu1 %1059 }
0x14c5   :  { %1020 = vrot.lane.b32.xlu0 %v3425_v59, %s3244_s30  ;;  %v1081_v59 = vld [vmem:[%s4065_s4 + $0x10] sm:$0xff] }
0x14c6   :  { %2922 = vmatprep.subr.mxu1 %v1081_v59 }
0x14c7   :  { %2923 = vmatpush3.msra.mxu1 %v1081_v59 }
0x14c9   :  { %1028 = vrot.lane.b32.xlu0 %v3444_v26, %s3244_s30  ;;  %v1080_v26 = vld [vmem:[%s4065_s4 + $0x8] sm:$0xff] }
0x14ca   :  { %2924 = vmatprep.subr.mxu1 %v1080_v26 }
0x14cb   :  { %2925 = vmatpush3.msra.mxu1 %v1080_v26 }
0x14cc   :  { %2926 = vmatprep.subr.mxu1 %v1079_v21 }
0x14cd   :  { %1047 = vrot.lane.b32.xlu0 %v3506_v30, %s3244_s30  ;;  %2927 = vmatpush3.msra.mxu1 %v1079_v21 }
0x14ce   :  { %2942 = vmatprep.subr.mxu1 %v3241_v2 }
0x14d1   :  { %1036 = vrot.lane.b32.xlu0 %v3463_v47, %s3244_s30  ;;  %v3553_v47 = vld [vmem:[%s4066_s5 + $0x18] sm:$0xff] }
0x14d2   :  { %2932 = vmatpush3.msra.mxu0 %v3553_v47 }
0x14d3   :  { %2933 = vmatprep.subr.mxu0 %v3241_v2 }
0x14d4   :  { %2934 = vmatpush3.msra.mxu0 %v3563_v22 }
0x14d5   :  { %1055 = vrot.lane.b32.xlu0 %v904_v52, %s3244_s30  ;;  %2935 = vmatprep.subr.mxu0 %v3241_v2 }
0x14d6   :  { %2936 = vmatpush3.msra.mxu0 %v3570_v7 }
0x14d7   :  { %2937 = vmatprep.subr.mxu0 %v3241_v2 }
0x14d8   :  { %2938 = vmatpush3.msra.mxu0 %v3576_v19 }
0x14d9   :  { %2940 = vmatmul.mubr.f32.vlgmr.msra.gmra.mxu0 %v3241_v2  ;;  %2953 = vmatprep.subr.mxu0 %v3241_v2 }
0x14da   :  { %2954 = vmatpush3.msra.mxu0 %v3553_v47  ;;  %2961 = vmatprep.mubr.msk.f32.mxu0 %vm3242_vm2, %v3241_v2 }
0x14db   :  { %2955 = vmatprep.subr.mxu0 %v3241_v2 }
0x14dc   :  { %2956 = vmatpush3.msra.mxu0 %v3563_v22 }
0x14dd   :  { %2957 = vmatprep.subr.mxu0 %v3241_v2 }
0x14de   :  { %2958 = vmatpush3.msra.mxu0 %v3570_v7 }
0x14df   :  { %2959 = vmatprep.subr.mxu0 %v3241_v2 }
0x14e0   :  { %2960 = vmatpush3.msra.mxu0 %v3576_v19 }
0x14e1   :  { %2975 = vmatprep.subr.mxu0 %v3241_v2 }
0x1533   :  { %v1009_v23 = vpop.permute.xlu0 %1008 }
0x1534   :  { %v3581_v27 = vmul.f32 %v3116_v0, %v1009_v23 }
0x1536   :  { %1063 = vrot.lane.b32.xlu0 %v3581_v27, %s3244_s30  ;;  %v1014_v28 = vrot.slane %v3581_v27, 6 }
0x1537   :  { %v1021_v30 = vpop.permute.xlu0 %1020 }
0x1538   :  { %1015 = vrot.lane.b32.xlu1 %v1014_v28, %s3244_s30  ;;  %v1027_v43 = vsel %vm1018_vm6, %v1021_v30, %v1025_v31 }
0x153b   :  { %v1029_v32 = vpop.permute.xlu0 %1028 }
0x153c   :  { %1067 = vrot.lane.b32.xlu1 %v1066_v29, %s3244_s30  ;;  %v1035_v20 = vsel %vm1018_vm6, %v1029_v32, %v1033_v33 }
0x153f   :  { %v1048_v34 = vpop.permute.xlu0 %1047 }
0x1540   :  { %v1054_v44 = vsel %vm1018_vm6, %v1048_v34, %v1052_v35 }
0x1541   :  { %v1076_v52 = vsel %vm1071_vm7, %v1046_v50, %v1054_v44 }
0x1543   :  { %v1037_v36 = vpop.permute.xlu0 %1036 }
0x1544   :  { %v1043_v24 = vsel %vm1018_vm6, %v1037_v36, %v1041_v37 }
0x1547   :  { %v1056_v38 = vpop.permute.xlu0 %1055 }
0x1548   :  { %v1062_v46 = vsel %vm1018_vm6, %v1056_v38, %v1060_v39 }
0x1549   :  { %v1077_v55 = vsel %vm70_vm0, %v1076_v52, %v1062_v46 }
0x1599   :  { %v1245_v49 = vpop.f32.mrf.mxu0 }
0x159b   :  { %v2941_v11 = vpop.f32.mrf.mxu0 }
0x15a8   :  { %v1064_v40 = vpop.permute.xlu0 %1063 }
0x15a9   :  { %2535 = vst.msk [vmem:[#allocation2 - $0x6] sm:$0x40] %vm2534_vm5, %v1064_v40 }
0x15aa   :  { %v1016_v42 = vpop.permute.xlu1 %1015 }
0x15ab   :  { %v1019_v45 = vsel %vm1018_vm6, %v3407_v41, %v1016_v42 }
0x15ac   :  { %v1072_v48 = vsel %vm1071_vm7, %v1019_v45, %v1027_v43  ;;  %vm2584_vm7 = vcmask 785408  }
0x15ad   :  { %v1073_v51 = vsel %vm70_vm0, %v1072_v48, %v1035_v20  ;;  %vm2196_vm0 = vcmask 1047559  }
0x15ae   :  { %v1068_v53 = vpop.permute.xlu1 %1067  ;;  %v1075_v54 = vsel %vm1074_vm8, %v1073_v51, %v1043_v24 }
0x15af   :  { %v1070_v41 = vsel %vm1018_vm6, %v1064_v40, %v1068_v53  ;;  %2928 = vmatprep.mubr.msk.f32.mxu1 %vm159_vm4, %v1075_v54 }
0x15b0   :  { %v1078_v56 = vsel %vm1074_vm8, %v1077_v55, %v1070_v41  ;;  %vm2664_vm8 = vcmask 17408  }
0x15b1   :  { %2929 = vmatmul.mubr.msk.f32.vlgmr.msra.gmra.mxu1 %vm159_vm4, %v1078_v56 }
0x15b2   :  { %2943 = vmatpush3.msra.mxu1 %v3553_v47  ;;  %2950 = vmatprep.mubr.msk.f32.mxu1 %vm3242_vm2, %v3241_v2 }
0x15b3   :  { %2944 = vmatprep.subr.mxu1 %v3241_v2 }
0x15b4   :  { %2945 = vmatpush3.msra.mxu1 %v3563_v22 }
0x15b5   :  { %2946 = vmatprep.subr.mxu1 %v3241_v2 }
0x15b6   :  { %2947 = vmatpush3.msra.mxu1 %v3570_v7 }
0x15b7   :  { %2948 = vmatprep.subr.mxu1 %v3241_v2 }
0x15b8   :  { %2949 = vmatpush3.msra.mxu1 %v3576_v19 }
0x15b9   :  { %2964 = vmatprep.subr.mxu1 %v3241_v2 }
0x1671   :  { %v2930_v58 = vpop.f32.mrf.mxu1 }
0x1672   :  { %v1168_v60 = vadd.f32 %v2930_v58, %v2703_v57 }
0x1673   :  { %v1162_v61 = vpop.f32.mrf.mxu1 }
0x1674   :  { %v1163_v62 = vadd.f32 %v2703_v57, %v1162_v61  ;;  %v1176_v63 = vrot.slane %v1168_v60, 6  ;;  %v1274_v0 = vrot.slane %v1168_v60, 2 }
0x1676   :  { %v3632_v1 = vsel %vm3379_vm3, %v1163_v62, %v1176_v63  ;;  %v3636_v4 = vsel %vm3379_vm3, %v1163_v62, %v1274_v0  ;;  %v1598_v12 = vrot.slane %v1163_v62, 6  ;;  %v1705_v13 = vrot.slane %v1163_v62, 2 }
0x1677   :  { %v1249_v25 = vadd.f32 %v1245_v49, %v3632_v1 }
0x1678   :  { %v3641_v3 = vsel %vm3379_vm3, %v1168_v60, %v1598_v12  ;;  %v3645_v14 = vsel %vm3379_vm3, %v1168_v60, %v1705_v13  ;;  %vm2541_vm3 = vcmask 391430  }
0x1679   :  { %3119 = vtanh.f32 %v1249_v25  ;;  %v2706_v5 = vmul.f32 -1.442695, %v1249_v25 }
0x167b   :  { %3121 = vpow2.f32 %v2706_v5 }
0x1686   :  { %v3120_v16 = vpop.eup %3119 }
0x1687   :  { %1259 = vrot.lane.b32.xlu0 %v3120_v16, %s3243_s3 }
0x1688   :  { %v3122_v17 = vpop.eup %3121 }
0x1689   :  { %v1253_v18 = vadd.f32 1.0, %v3122_v17 }
0x168b   :  { %3123 = vrcp.f32 %v1253_v18 }
0x1698   :  { %v3124_v6 = vpop.eup %3123 }
0x1699   :  { %v1257_v26 = vmul.f32 0.0, %v3124_v6 }
0x16f9   :  { %v1260_v10 = vpop.permute.xlu0 %1259 }
0x16fa   :  { %v1262_v59 = vmul.f32 %v3124_v6, %v1260_v10 }
0x16fc   :  { %1264 = vrot.lane.b32.xlu1 %v1262_v59, %s3244_s30 }
0x176e   :  { %v1265_v21 = vpop.permute.xlu1 %1264 }
0x176f   :  { %v1267_v23 = vadd.f32 %v1265_v21, %v1257_v26 }
0x1771   :  { %3125 = vtanh.f32 %v1267_v23  ;;  %v1364_v43 = vrot.slane %v1267_v23, 6 }
0x177e   :  { %v3126_v15 = vpop.eup %3125 }
0x177f   :  { %1270 = vrot.lane.b32.xlu0 %v3126_v15, %s3243_s3 }
0x17f1   :  { %v1271_v28 = vpop.permute.xlu0 %1270 }
0x17f2   :  { %v3650_v29 = vmul.f32 %v3124_v6, %v1271_v28 }
0x17f4   :  { %1278 = vrot.lane.b32.xlu1 %v3650_v29, %s3244_s30 }
0x1866   :  { %v3654_v30 = vpop.permute.xlu1 %1278 }
0x1867   :  { %2951 = vmatmul.mubr.msk.f32.vlgmr.msra.gmra.mxu1 %vm159_vm4, %v3654_v30 }
0x1868   :  { %2965 = vmatpush3.msra.mxu1 %v3553_v47  ;;  %2972 = vmatprep.mubr.msk.f32.mxu1 %vm3242_vm2, %v3241_v2 }
0x1869   :  { %2966 = vmatprep.subr.mxu1 %v3241_v2 }
0x186a   :  { %2967 = vmatpush3.msra.mxu1 %v3563_v22 }
0x186b   :  { %2968 = vmatprep.subr.mxu1 %v3241_v2 }
0x186c   :  { %2969 = vmatpush3.msra.mxu1 %v3570_v7 }
0x186d   :  { %2970 = vmatprep.subr.mxu1 %v3241_v2 }
0x186e   :  { %2971 = vmatpush3.msra.mxu1 %v3576_v19 }
0x186f   :  { %2986 = vmatprep.subr.mxu1 %v3241_v2 }
0x1927   :  { %v1348_v31 = vpop.f32.mrf.mxu1 }
0x1928   :  { %v1353_v32 = vrot.slane %v1348_v31, 6 }
0x1929   :  { %v2952_v33 = vpop.f32.mrf.mxu1 }
0x192a   :  { %v1355_v34 = vadd.f32 %v1353_v32, %v3636_v4 }
0x192c   :  { %3127 = vtanh.f32 %v1355_v34  ;;  %v2708_v36 = vmul.f32 -1.442695, %v1355_v34 }
0x192e   :  { %3129 = vpow2.f32 %v2708_v36 }
0x1939   :  { %v3128_v35 = vpop.eup %3127 }
0x193a   :  { %1368 = vrot.lane.b32.xlu0 %v3128_v35, %s3243_s3 }
0x193b   :  { %v3130_v37 = vpop.eup %3129 }
0x193c   :  { %v1359_v38 = vadd.f32 1.0, %v3130_v37 }
0x193e   :  { %3131 = vrcp.f32 %v1359_v38 }
0x194b   :  { %v3132_v39 = vpop.eup %3131 }
0x194c   :  { %v1366_v44 = vmul.f32 %v3132_v39, %v1364_v43 }
0x19ac   :  { %v1369_v40 = vpop.permute.xlu0 %1368 }
0x19ad   :  { %v1371_v42 = vmul.f32 %v3132_v39, %v1369_v40 }
0x19af   :  { %1373 = vrot.lane.b32.xlu1 %v1371_v42, %s3244_s30 }
0x1a21   :  { %v1374_v45 = vpop.permute.xlu1 %1373 }
0x1a22   :  { %v1376_v20 = vadd.f32 %v1374_v45, %v1366_v44 }
0x1a24   :  { %3133 = vtanh.f32 %v1376_v20  ;;  %v1471_v61 = vrot.slane %v1376_v20, 6 }
0x1a31   :  { %v3134_v46 = vpop.eup %3133 }
0x1a32   :  { %1379 = vrot.lane.b32.xlu0 %v3134_v46, %s3243_s3 }
0x1aa4   :  { %v1380_v48 = vpop.permute.xlu0 %1379 }
0x1aa5   :  { %v3672_v50 = vmul.f32 %v3132_v39, %v1380_v48 }
0x1aa7   :  { %v1384_v24 = vrot.slane %v3672_v50, 2 }
0x1aa9   :  { %1385 = vrot.lane.b32.xlu1 %v1384_v24, %s3244_s30 }
0x1b1b   :  { %v1386_v51 = vpop.permute.xlu1 %1385 }
0x1b1c   :  { %2962 = vmatmul.mubr.msk.f32.vlgmr.msra.gmra.mxu0 %vm159_vm4, %v1386_v51 }
0x1b1d   :  { %2976 = vmatpush3.msra.mxu0 %v3553_v47  ;;  %2983 = vmatprep.mubr.msk.f32.mxu0 %vm3242_vm2, %v3241_v2 }
0x1b1e   :  { %2977 = vmatprep.subr.mxu0 %v3241_v2 }
0x1b1f   :  { %2978 = vmatpush3.msra.mxu0 %v3563_v22 }
0x1b20   :  { %2979 = vmatprep.subr.mxu0 %v3241_v2 }
0x1b21   :  { %2980 = vmatpush3.msra.mxu0 %v3570_v7 }
0x1b22   :  { %2981 = vmatprep.subr.mxu0 %v3241_v2 }
0x1b23   :  { %2982 = vmatpush3.msra.mxu0 %v3576_v19 }
0x1b24   :  { %2997 = vmatprep.subr.mxu0 %v3241_v2 }
0x1bdc   :  { %v1455_v52 = vpop.f32.mrf.mxu0 }
0x1bdd   :  { %v1460_v53 = vrot.slane %v1455_v52, 4 }
0x1bde   :  { %v2963_v54 = vpop.f32.mrf.mxu0 }
0x1bdf   :  { %v1462_v55 = vadd.f32 %v1460_v53, %v3632_v1 }
0x1be1   :  { %3135 = vtanh.f32 %v1462_v55  ;;  %v2710_v56 = vmul.f32 -1.442695, %v1462_v55 }
0x1be3   :  { %3137 = vpow2.f32 %v2710_v56 }
0x1bee   :  { %v3136_v41 = vpop.eup %3135 }
0x1bef   :  { %1475 = vrot.lane.b32.xlu0 %v3136_v41, %s3243_s3 }
0x1bf0   :  { %v3138_v49 = vpop.eup %3137 }
0x1bf1   :  { %v1466_v11 = vadd.f32 1.0, %v3138_v49 }
0x1bf3   :  { %3139 = vrcp.f32 %v1466_v11 }
0x1c00   :  { %v3140_v57 = vpop.eup %3139 }
0x1c01   :  { %v1473_v62 = vmul.f32 %v3140_v57, %v1471_v61 }
0x1c61   :  { %v1476_v58 = vpop.permute.xlu0 %1475 }
0x1c62   :  { %v1478_v60 = vmul.f32 %v3140_v57, %v1476_v58 }
0x1c64   :  { %1480 = vrot.lane.b32.xlu1 %v1478_v60, %s3244_s30 }
0x1cd6   :  { %v1481_v63 = vpop.permute.xlu1 %1480 }
0x1cd7   :  { %v1483_v0 = vadd.f32 %v1481_v63, %v1473_v62 }
0x1cd9   :  { %3141 = vtanh.f32 %v1483_v0  ;;  %v1578_v31 = vrot.slane %v1483_v0, 6 }
0x1ce6   :  { %v3142_v1 = vpop.eup %3141 }
0x1ce7   :  { %1486 = vrot.lane.b32.xlu0 %v3142_v1, %s3243_s3 }
0x1d59   :  { %v1487_v12 = vpop.permute.xlu0 %1486 }
0x1d5a   :  { %v3691_v13 = vmul.f32 %v3140_v57, %v1487_v12 }
0x1d5c   :  { %v1491_v25 = vrot.slane %v3691_v13, 4 }
0x1d5e   :  { %1492 = vrot.lane.b32.xlu1 %v1491_v25, %s3244_s30 }
0x1dd0   :  { %v1493_v16 = vpop.permute.xlu1 %1492 }
0x1dd1   :  { %2973 = vmatmul.mubr.msk.f32.vlgmr.msra.gmra.mxu1 %vm159_vm4, %v1493_v16 }
0x1dd2   :  { %2987 = vmatpush3.msra.mxu1 %v3553_v47  ;;  %2994 = vmatprep.mubr.msk.f32.mxu1 %vm3242_vm2, %v3241_v2 }
0x1dd3   :  { %2988 = vmatprep.subr.mxu1 %v3241_v2 }
0x1dd4   :  { %2989 = vmatpush3.msra.mxu1 %v3563_v22 }
0x1dd5   :  { %2990 = vmatprep.subr.mxu1 %v3241_v2 }
0x1dd6   :  { %2991 = vmatpush3.msra.mxu1 %v3570_v7 }
0x1dd7   :  { %2992 = vmatprep.subr.mxu1 %v3241_v2 }
0x1dd8   :  { %2993 = vmatpush3.msra.mxu1 %v3576_v19 }
0x1dd9   :  { %3008 = vmatprep.subr.mxu1 %v3241_v2 }
0x1e91   :  { %v1562_v5 = vpop.f32.mrf.mxu1 }
0x1e92   :  { %v1567_v17 = vrot.slane %v1562_v5, 2 }
0x1e93   :  { %v2974_v18 = vpop.f32.mrf.mxu1 }
0x1e94   :  { %v1569_v6 = vadd.f32 %v1567_v17, %v3636_v4 }
0x1e96   :  { %3143 = vtanh.f32 %v1569_v6  ;;  %v2712_v59 = vmul.f32 -1.442695, %v1569_v6 }
0x1e98   :  { %3145 = vpow2.f32 %v2712_v59 }
0x1ea3   :  { %v3144_v10 = vpop.eup %3143 }
0x1ea4   :  { %1582 = vrot.lane.b32.xlu0 %v3144_v10, %s3243_s3 }
0x1ea5   :  { %v3146_v26 = vpop.eup %3145 }
0x1ea6   :  { %v1573_v21 = vadd.f32 1.0, %v3146_v26 }
0x1ea8   :  { %3147 = vrcp.f32 %v1573_v21 }
0x1eb5   :  { %v3148_v23 = vpop.eup %3147 }
0x1eb6   :  { %v1580_v32 = vmul.f32 %v3148_v23, %v1578_v31 }
0x1f16   :  { %v1583_v15 = vpop.permute.xlu0 %1582 }
0x1f17   :  { %v1585_v28 = vmul.f32 %v3148_v23, %v1583_v15 }
0x1f19   :  { %1587 = vrot.lane.b32.xlu1 %v1585_v28, %s3244_s30 }
0x1f8b   :  { %v1588_v33 = vpop.permute.xlu1 %1587 }
0x1f8c   :  { %v1590_v34 = vadd.f32 %v1588_v33, %v1580_v32 }
0x1f8e   :  { %3149 = vtanh.f32 %v1590_v34  ;;  %v1686_v51 = vrot.slane %v1590_v34, 6 }
0x1f9b   :  { %v3150_v4 = vpop.eup %3149 }
0x1f9c   :  { %1593 = vrot.lane.b32.xlu0 %v3150_v4, %s3243_s3 }
0x200e   :  { %v1594_v35 = vpop.permute.xlu0 %1593 }
0x200f   :  { %v3710_v36 = vmul.f32 %v3148_v23, %v1594_v35 }
0x2011   :  { %v1602_v37 = vrot.slane %v3710_v36, 6 }
0x2013   :  { %1603 = vrot.lane.b32.xlu1 %v1602_v37, %s3244_s30 }
0x2085   :  { %v3714_v38 = vpop.permute.xlu1 %1603 }
0x2086   :  { %2984 = vmatmul.mubr.msk.f32.vlgmr.msra.gmra.mxu0 %vm159_vm4, %v3714_v38 }
0x2087   :  { %2998 = vmatpush3.msra.mxu0 %v3553_v47  ;;  %3005 = vmatprep.mubr.msk.f32.mxu0 %vm3242_vm2, %v3241_v2 }
0x2088   :  { %2999 = vmatprep.subr.mxu0 %v3241_v2 }
0x2089   :  { %3000 = vmatpush3.msra.mxu0 %v3563_v22 }
0x208a   :  { %3001 = vmatprep.subr.mxu0 %v3241_v2 }
0x208b   :  { %3002 = vmatpush3.msra.mxu0 %v3570_v7 }
0x208c   :  { %3003 = vmatprep.subr.mxu0 %v3241_v2 }
0x208d   :  { %3004 = vmatpush3.msra.mxu0 %v3576_v19 }
0x208e   :  { %3019 = vmatprep.subr.mxu0 %v3241_v2 }
0x2146   :  { %v1673_v39 = vpop.f32.mrf.mxu0 }
0x2147   :  { %v1677_v40 = vadd.f32 %v1673_v39, %v3641_v3 }
0x2148   :  { %v2985_v42 = vpop.f32.mrf.mxu0 }
0x2149   :  { %3151 = vtanh.f32 %v1677_v40  ;;  %v2714_v44 = vmul.f32 -1.442695, %v1677_v40 }
0x214b   :  { %3153 = vpow2.f32 %v2714_v44 }
0x2156   :  { %v3152_v43 = vpop.eup %3151 }
0x2157   :  { %1690 = vrot.lane.b32.xlu0 %v3152_v43, %s3243_s3 }
0x2158   :  { %v3154_v45 = vpop.eup %3153 }
0x2159   :  { %v1681_v20 = vadd.f32 1.0, %v3154_v45 }
0x215b   :  { %3155 = vrcp.f32 %v1681_v20 }
0x2168   :  { %v3156_v46 = vpop.eup %3155 }
0x2169   :  { %v1688_v52 = vmul.f32 %v3156_v46, %v1686_v51 }
0x21c9   :  { %v1691_v48 = vpop.permute.xlu0 %1690 }
0x21ca   :  { %v1693_v24 = vmul.f32 %v3156_v46, %v1691_v48 }
0x21cc   :  { %1695 = vrot.lane.b32.xlu1 %v1693_v24, %s3244_s30 }
0x223e   :  { %v1696_v53 = vpop.permute.xlu1 %1695 }
0x223f   :  { %v1698_v54 = vadd.f32 %v1696_v53, %v1688_v52 }
0x2241   :  { %3157 = vtanh.f32 %v1698_v54 }
0x224e   :  { %v3158_v55 = vpop.eup %3157 }
0x224f   :  { %1701 = vrot.lane.b32.xlu0 %v3158_v55, %s3243_s3 }
0x22c1   :  { %v1702_v41 = vpop.permute.xlu0 %1701 }
0x22c2   :  { %v3732_v56 = vmul.f32 %v3156_v46, %v1702_v41 }
0x22c4   :  { %1709 = vrot.lane.b32.xlu1 %v3732_v56, %s3244_s30 }
0x2336   :  { %v3736_v49 = vpop.permute.xlu1 %1709 }
0x2337   :  { %2995 = vmatmul.mubr.msk.f32.vlgmr.msra.gmra.mxu1 %vm159_vm4, %v3736_v49 }
0x2338   :  { %3009 = vmatpush3.msra.mxu1 %v3553_v47  ;;  %3016 = vmatprep.mubr.msk.f32.mxu1 %vm3242_vm2, %v3241_v2 }
0x2339   :  { %3010 = vmatprep.subr.mxu1 %v3241_v2 }
0x233a   :  { %3011 = vmatpush3.msra.mxu1 %v3563_v22 }
0x233b   :  { %3012 = vmatprep.subr.mxu1 %v3241_v2 }
0x233c   :  { %3013 = vmatpush3.msra.mxu1 %v3570_v7 }
0x233d   :  { %3014 = vmatprep.subr.mxu1 %v3241_v2 }
0x233e   :  { %3015 = vmatpush3.msra.mxu1 %v3576_v19  ;;  %v1795_v19 = vrot.slane %v1698_v54, 6 }
0x23f7   :  { %v1779_v11 = vpop.f32.mrf.mxu1 }
0x23f8   :  { %v1784_v57 = vrot.slane %v1779_v11, 6  ;;  %v2065_v11 = vrot.slane %v3691_v13, 2 }
0x23f9   :  { %v2996_v58 = vpop.f32.mrf.mxu1 }
0x23fa   :  { %v1786_v47 = vadd.f32 %v1784_v57, %v3645_v14  ;;  %v2073_v57 = vrot.slane %v3672_v50, 6 }
0x23fc   :  { %3159 = vtanh.f32 %v1786_v47  ;;  %v2716_v61 = vmul.f32 -1.442695, %v1786_v47 }
0x23fe   :  { %3161 = vpow2.f32 %v2716_v61 }
0x2409   :  { %v3160_v60 = vpop.eup %3159 }
0x240a   :  { %1799 = vrot.lane.b32.xlu0 %v3160_v60, %s3243_s3 }
0x240b   :  { %v3162_v22 = vpop.eup %3161 }
0x240c   :  { %v1790_v62 = vadd.f32 1.0, %v3162_v22 }
0x240e   :  { %3163 = vrcp.f32 %v1790_v62 }
0x241b   :  { %v3164_v63 = vpop.eup %3163 }
0x241c   :  { %v1797_v1 = vmul.f32 %v3164_v63, %v1795_v19 }
0x247c   :  { %v1800_v7 = vpop.permute.xlu0 %1799 }
0x247d   :  { %v1802_v0 = vmul.f32 %v3164_v63, %v1800_v7  ;;  %v2081_v7 = vrot.slane %v3650_v29, 2  ;;  %v2721_v29 = vld [vmem:[%s4068_s7] ss:$0 sm:$0xff]  ;;  %s3246_s7 = smov 48  }
0x247f   :  { %1804 = vrot.lane.b32.xlu1 %v1802_v0, %s3244_s30 }
0x24f1   :  { %v1805_v12 = vpop.permute.xlu1 %1804 }
0x24f2   :  { %v1807_v25 = vadd.f32 %v1805_v12, %v1797_v1 }
0x24f4   :  { %3165 = vtanh.f32 %v1807_v25  ;;  %v1902_v4 = vrot.slane %v1807_v25, 6 }
0x2501   :  { %v3166_v16 = vpop.eup %3165 }
0x2502   :  { %1810 = vrot.lane.b32.xlu0 %v3166_v16, %s3243_s3 }
0x2574   :  { %v1811_v5 = vpop.permute.xlu0 %1810 }
0x2575   :  { %v3753_v17 = vmul.f32 %v3164_v63, %v1811_v5 }
0x2577   :  { %v1815_v18 = vrot.slane %v3753_v17, 2 }
0x2579   :  { %1816 = vrot.lane.b32.xlu1 %v1815_v18, %s3244_s30 }
0x25eb   :  { %v1817_v6 = vpop.permute.xlu1 %1816 }
0x25ec   :  { %3006 = vmatmul.mubr.msk.f32.vlgmr.msra.gmra.mxu0 %vm159_vm4, %v1817_v6 }
0x25ed   :  { %3043 = vmatprep.mubr.msk.f32.mxu0 %vm3242_vm2, %v3241_v2  ;;  %vm2539_vm2 = vcmask 261255  }
0x26ac   :  { %v1886_v10 = vpop.f32.mrf.mxu0 }
0x26ad   :  { %v1891_v59 = vrot.slane %v1886_v10, 4 }
0x26ae   :  { %v3007_v26 = vpop.f32.mrf.mxu0 }
0x26af   :  { %v1893_v21 = vadd.f32 %v1891_v59, %v3641_v3 }
0x26b1   :  { %3167 = vtanh.f32 %v1893_v21  ;;  %v2718_v15 = vmul.f32 -1.442695, %v1893_v21 }
0x26b3   :  { %3169 = vpow2.f32 %v2718_v15 }
0x26be   :  { %v3168_v23 = vpop.eup %3167 }
0x26bf   :  { %1906 = vrot.lane.b32.xlu0 %v3168_v23, %s3243_s3 }
0x26c0   :  { %v3170_v28 = vpop.eup %3169 }
0x26c1   :  { %v1897_v31 = vadd.f32 1.0, %v3170_v28 }
0x26c3   :  { %3171 = vrcp.f32 %v1897_v31 }
0x26d0   :  { %v3172_v32 = vpop.eup %3171 }
0x26d1   :  { %v1904_v35 = vmul.f32 %v3172_v32, %v1902_v4 }
0x2731   :  { %v1907_v33 = vpop.permute.xlu0 %1906 }
0x2732   :  { %v1909_v34 = vmul.f32 %v3172_v32, %v1907_v33 }
0x2734   :  { %1911 = vrot.lane.b32.xlu1 %v1909_v34, %s3244_s30  ;;  %v3822_v34 = vsel %vm1018_vm6, %v3736_v49, %v3714_v38 }
0x27a6   :  { %v1912_v37 = vpop.permute.xlu1 %1911 }
0x27a7   :  { %v1914_v39 = vadd.f32 %v1912_v37, %v1904_v35 }
0x27a9   :  { %3173 = vtanh.f32 %v1914_v39  ;;  %v2009_v58 = vrot.slane %v1914_v39, 6  ;;  %v2115_v39 = vmul.f32 %v2721_v29, %v3822_v34 }
0x27b6   :  { %v3174_v3 = vpop.eup %3173 }
0x27b7   :  { %1917 = vrot.lane.b32.xlu0 %v3174_v3, %s3243_s3  ;;  %v2132_v3 = vsel %vm2119_vm9, %v2115_v39, 0.0 }
0x2829   :  { %v1918_v40 = vpop.permute.xlu0 %1917 }
0x282a   :  { %v1920_v42 = vmul.f32 %v3172_v32, %v1918_v40 }
0x282c   :  { %v1922_v43 = vrot.slane %v1920_v42, 4  ;;  %v2038_v62 = vrot.slane %v1920_v42, 2 }
0x282e   :  { %1923 = vrot.lane.b32.xlu1 %v1922_v43, %s3244_s30 }
0x28a0   :  { %v1924_v44 = vpop.permute.xlu1 %1923 }
0x28a1   :  { %3017 = vmatmul.mubr.msk.f32.vlgmr.msra.gmra.mxu1 %vm159_vm4, %v1924_v44  ;;  %vm2532_vm4 = vcmask 1040384  }
0x2961   :  { %v1993_v45 = vpop.f32.mrf.mxu1 }
0x2962   :  { %v1998_v20 = vrot.slane %v1993_v45, 2 }
0x2963   :  { %v3018_v46 = vpop.f32.mrf.mxu1 }
0x2964   :  { %v2000_v48 = vadd.f32 %v1998_v20, %v3645_v14  ;;  %v2054_v14 = vrot.slane %v3732_v56, 2  ;;  %v2046_v56 = vrot.slane %v3753_v17, 6 }
0x2966   :  { %3175 = vtanh.f32 %v2000_v48  ;;  %v2720_v51 = vmul.f32 -1.442695, %v2000_v48 }
0x2968   :  { %3177 = vpow2.f32 %v2720_v51 }
0x2973   :  { %v3176_v24 = vpop.eup %3175 }
0x2974   :  { %2013 = vrot.lane.b32.xlu0 %v3176_v24, %s3243_s3 }
0x2975   :  { %v3178_v52 = vpop.eup %3177 }
0x2976   :  { %v2004_v53 = vadd.f32 1.0, %v3178_v52 }
0x2978   :  { %3179 = vrcp.f32 %v2004_v53 }
0x2985   :  { %v3180_v54 = vpop.eup %3179 }
0x2986   :  { %v2011_v47 = vmul.f32 %v3180_v54, %v2009_v58 }
0x29e6   :  { %v2014_v55 = vpop.permute.xlu0 %2013 }
0x29e7   :  { %v2016_v41 = vmul.f32 %v3180_v54, %v2014_v55 }
0x29e9   :  { %2018 = vrot.lane.b32.xlu1 %v2016_v41, %s3244_s30 }
0x29ed   :  { %2035 = vrot.lane.b32.xlu1 %v3672_v50, %s3244_s30 }
0x29f1   :  { %2043 = vrot.lane.b32.xlu1 %v3691_v13, %s3244_s30 }
0x29f5   :  { %2055 = vrot.lane.b32.xlu1 %v2054_v14, %s3244_s30  ;;  %v3856_v14 = vshrl.u32 %v38_v8, 7 }
0x29f9   :  { %2066 = vrot.lane.b32.xlu1 %v2065_v11, %s3244_s30 }
0x29fd   :  { %2074 = vrot.lane.b32.xlu1 %v2073_v57, %s3244_s30  ;;  %v3860_v57 = vsub.s32 %v3373_v9, %v3856_v14 }
0x2a5b   :  { %v2019_v60 = vpop.permute.xlu1 %2018 }
0x2a5c   :  { %v2021_v61 = vadd.f32 %v2019_v60, %v2011_v47 }
0x2a5e   :  { %3181 = vtanh.f32 %v2021_v61 }
0x2a5f   :  { %v2036_v0 = vpop.permute.xlu1 %2035 }
0x2a63   :  { %v2044_v1 = vpop.permute.xlu1 %2043 }
0x2a67   :  { %v2056_v16 = vpop.permute.xlu1 %2055 }
0x2a6b   :  { %v3182_v22 = vpop.eup %3181  ;;  %v2067_v23 = vpop.permute.xlu1 %2066 }
0x2a6c   :  { %2024 = vrot.lane.b32.xlu0 %v3182_v22, %s3243_s3 }
0x2a6f   :  { %v2075_v32 = vpop.permute.xlu1 %2074 }
0x2a70   :  { %2039 = vrot.lane.b32.xlu0 %v2038_v62, %s3244_s30 }
0x2a74   :  { %2047 = vrot.lane.b32.xlu0 %v2046_v56, %s3244_s30 }
0x2a78   :  { %2051 = vrot.lane.b32.xlu0 %v3710_v36, %s3244_s30 }
0x2a7c   :  { %2062 = vrot.lane.b32.xlu0 %v3753_v17, %s3244_s30 }
0x2a80   :  { %2070 = vrot.lane.b32.xlu0 %v1920_v42, %s3244_s30 }
0x2ade   :  { %v2025_v50 = vpop.permute.xlu0 %2024 }
0x2adf   :  { %v3788_v13 = vmul.f32 %v3180_v54, %v2025_v50 }
0x2ae1   :  { %2078 = vrot.lane.b32.xlu0 %v3788_v13, %s3244_s30  ;;  %v2030_v63 = vrot.slane %v3788_v13, 6 }
0x2ae2   :  { %v2040_v36 = vpop.permute.xlu0 %2039 }
0x2ae3   :  { %2031 = vrot.lane.b32.xlu1 %v2030_v63, %s3244_s30  ;;  %v3810_v59 = vsel %vm1018_vm6, %v2036_v0, %v2040_v36 }
0x2ae4   :  { %v2087_v15 = vrot.slane %v3810_v59, 2  ;;  %v2568_v59 = vld [vmem:[%s4069_s8 + $0x18] sm:$0xff] }
0x2ae6   :  { %v2048_v19 = vpop.permute.xlu0 %2047  ;;  %v2112_v33 = vmul.f32 %v2721_v29, %v2087_v15 }
0x2ae7   :  { %2082 = vrot.lane.b32.xlu1 %v2081_v7, %s3244_s30  ;;  %v3797_v12 = vsel %vm1018_vm6, %v2044_v1, %v2048_v19 }
0x2ae8   :  { %v2090_v5 = vrot.slane %v3797_v12, 4  ;;  %v2123_v37 = vsel %vm2119_vm9, %v2112_v33, 0.0 }
0x2aea   :  { %v2052_v25 = vpop.permute.xlu0 %2051  ;;  %v2113_v6 = vmul.f32 %v2721_v29, %v2090_v5 }
0x2aeb   :  { %v3801_v17 = vsel %vm1018_vm6, %v2052_v25, %v2056_v16 }
0x2aec   :  { %v2093_v18 = vrot.slane %v3801_v17, 6  ;;  %v2126_v26 = vsel %vm2119_vm9, %v2113_v6, 0.0 }
0x2aee   :  { %v2063_v10 = vpop.permute.xlu0 %2062  ;;  %v2114_v21 = vmul.f32 %v2721_v29, %v2093_v18 }
0x2aef   :  { %v3835_v38 = vsel %vm1018_vm6, %v2063_v10, %v2067_v23  ;;  %v2210_v23 = vsub.s32 1, %v3856_v14 }
0x2af0   :  { %v2129_v28 = vsel %vm2119_vm9, %v2114_v21, 0.0  ;;  %v2096_v43 = vrot.slane %v3835_v38, 2  ;;  %v2206_v21 = vsub.s32 0, %v3856_v14 }
0x2af2   :  { %v2071_v31 = vpop.permute.xlu0 %2070  ;;  %v2116_v24 = vmul.f32 %v2721_v29, %v2096_v43 }
0x2af3   :  { %v3825_v4 = vsel %vm1018_vm6, %v2071_v31, %v2075_v32  ;;  %v2218_v31 = vsub.s32 3, %v3856_v14 }
0x2af4   :  { %v2099_v35 = vrot.slane %v3825_v4, 4  ;;  %v2135_v53 = vsel %vm2119_vm9, %v2116_v24, 0.0 }
0x2af6   :  { %v2117_v40 = vmul.f32 %v2721_v29, %v2099_v35 }
0x2af8   :  { %v2138_v42 = vsel %vm2119_vm9, %v2117_v40, 0.0 }
0x2b00   :  { %2127 = vadd.xlane.f32.xlu0 %v2126_v26  ;;  %v3245_v26 = vmov 0  }
0x2b01   :  { %3054 = vset.pattern.permute.xlu1 %v3245_v26  ;;  %3053 = vset.pattern.permute.xlu0 %v3245_v26 }
0x2b04   :  { %2130 = vadd.xlane.f32.xlu0 %v2129_v28  ;;  %v2214_v28 = vsub.s32 2, %v3856_v14 }
0x2b0b   :  { %2124 = vadd.xlane.f32.xlu1 %v2123_v37 }
0x2b0f   :  { %2133 = vadd.xlane.f32.xlu1 %v2132_v3 }
0x2b13   :  { %2139 = vadd.xlane.f32.xlu1 %v2138_v42  ;;  %v2222_v42 = vsub.s32 4, %v3856_v14 }
0x2b53   :  { %v2079_v49 = vpop.permute.xlu0 %2078 }
0x2b54   :  { %2548 = vst.msk [vmem:[#allocation2 - $0x5] sm:$0x40] %vm2534_vm5, %v2079_v49  ;;  %vm2546_vm5 = vcmask 523655  }
0x2b55   :  { %v2032_v44 = vpop.permute.xlu1 %2031 }
0x2b56   :  { %v3841_v45 = vsel %vm1018_vm6, %v3654_v30, %v2032_v44 }
0x2b57   :  { %v2111_v20 = vmul.f32 %v2721_v29, %v3841_v45 }
0x2b59   :  { %v2083_v46 = vpop.permute.xlu1 %2082  ;;  %v2120_v48 = vsel %vm2119_vm9, %v2111_v20, 0.0 }
0x2b5a   :  { %v3848_v51 = vsel %vm1018_vm6, %v2079_v49, %v2083_v46  ;;  %2121 = vadd.xlane.f32.xlu0 %v2120_v48  ;;  %v2226_v48 = vsub.s32 5, %v3856_v14  ;;  %vm2562_vm6 = vcmask 779776  }
0x2b5b   :  { %v2102_v52 = vrot.slane %v3848_v51, 6  ;;  %v2565_v51 = vld [vmem:[%s4069_s8] sm:$0xff] }
0x2b5d   :  { %v2118_v30 = vmul.f32 %v2721_v29, %v2102_v52 }
0x2b5e   :  { %2136 = vadd.xlane.f32.xlu0 %v2135_v53 }
0x2b5f   :  { %v2141_v54 = vsel %vm2119_vm9, %v2118_v30, 0.0 }
0x2b62   :  { %2142 = vadd.xlane.f32.xlu0 %v2141_v54  ;;  %v2230_v54 = vsub.s32 6, %v3856_v14 }
0x2b89   :  { %v2128_v55 = vpop.xlane.xlu0 %2127 }
0x2b8a   :  { %v2163_v22 = vrot.slane %v2128_v55, %v3860_v57 }
0x2b8d   :  { %v2131_v11 = vpop.xlane.xlu0 %2130 }
0x2b8e   :  { %v2167_v8 = vrot.slane %v2131_v11, %v3860_v57 }
0x2b94   :  { %v2125_v41 = vpop.xlane.xlu1 %2124 }
0x2b95   :  { %v2159_v60 = vrot.slane %v2125_v41, %v3860_v57 }
0x2b98   :  { %v3862_v58 = vpop.xlane.xlu1 %2133 }
0x2b99   :  { %v2171_v9 = vrot.slane %v3862_v58, %v3860_v57 }
0x2b9c   :  { %v2140_v63 = vpop.xlane.xlu1 %2139 }
0x2b9d   :  { %v2179_v1 = vrot.slane %v2140_v63, %v3860_v57 }
0x2be3   :  { %v2122_v47 = vpop.xlane.xlu0 %2121 }
0x2be4   :  { %v2155_v61 = vrot.slane %v2122_v47, %v3860_v57 }
0x2be6   :  { %v2185_v62 = vsel %vm2184_vm10, %v2159_v60, %v2155_v61  ;;  %v2234_v60 = vsub.s32 7, %v3856_v14 }
0x2be7   :  { %v2187_v56 = vsel %vm2186_vm11, %v2163_v22, %v2185_v62  ;;  %v2137_v50 = vpop.xlane.xlu0 %2136 }
0x2be8   :  { %v2175_v7 = vrot.slane %v2137_v50, %v3860_v57  ;;  %v2189_v36 = vsel %vm2188_vm12, %v2167_v8, %v2187_v56 }
0x2be9   :  { %v2191_v0 = vsel %vm2190_vm13, %v2171_v9, %v2189_v36 }
0x2bea   :  { %v2193_v19 = vsel %vm2192_vm14, %v2175_v7, %v2191_v0 }
0x2beb   :  { %v2143_v25 = vpop.xlane.xlu0 %2142  ;;  %v2195_v29 = vsel %vm2194_vm15, %v2179_v1, %v2193_v19 }
0x2bec   :  { %v2183_v16 = vrot.slane %v2143_v25, %v3860_v57 }
0x2bee   :  { %v2197_v6 = vsel %vm2196_vm0, %v2183_v16, %v2195_v29 }
0x2bef   :  { %v2200_v10 = vsel %vm2199_vm1, %v2197_v6, -inf }
0x2bf0   :  { %2201 = vmax.xlane.f32.xlu1 %v2200_v10 }
0x2c79   :  { %v2202_v32 = vpop.xlane.xlu1 %2201 }
0x2c7a   :  { %v2207_v33 = vrot.slane %v2202_v32, %v2206_v21  ;;  %v2211_v37 = vrot.slane %v2202_v32, %v2210_v23  ;;  %v2215_v39 = vrot.slane %v2202_v32, %v2214_v28  ;;  %v2219_v49 = vrot.slane %v2202_v32, %v2218_v31 }
0x2c7b   :  { %v2223_v24 = vrot.slane %v2202_v32, %v2222_v42  ;;  %v2231_v61 = vrot.slane %v2202_v32, %v2230_v54  ;;  %v2235_v62 = vrot.slane %v2202_v32, %v2234_v60 }
0x2c7c   :  { %v2244_v3 = vsub.f32 %v2122_v47, %v2207_v33  ;;  %v2245_v40 = vsub.f32 %v2125_v41, %v2211_v37  ;;  %v2246_v44 = vsub.f32 %v2128_v55, %v2215_v39  ;;  %v2247_v53 = vsub.f32 %v2131_v11, %v2219_v49 }
0x2c7d   :  { %v2227_v41 = vrot.slane %v2202_v32, %v2226_v48  ;;  %v2248_v47 = vsub.f32 %v3862_v58, %v2223_v24  ;;  %v2250_v9 = vsub.f32 %v2140_v63, %v2231_v61  ;;  %v2251_v58 = vsub.f32 %v2143_v25, %v2235_v62 }
0x2c7e   :  { %v2252_v20 = vmul.f32 1.442695, %v2244_v3  ;;  %v2254_v46 = vmul.f32 1.442695, %v2245_v40  ;;  %v2256_v30 = vmul.f32 1.442695, %v2246_v44 }
0x2c7f   :  { %v2258_v55 = vmul.f32 1.442695, %v2247_v53  ;;  %v2249_v22 = vsub.f32 %v2137_v50, %v2227_v41  ;;  %v2260_v8 = vmul.f32 1.442695, %v2248_v47  ;;  %v2264_v36 = vmul.f32 1.442695, %v2250_v9 }
0x2c80   :  { %3183 = vpow2.f32 %v2252_v20  ;;  %v2266_v0 = vmul.f32 1.442695, %v2251_v58 }
0x2c81   :  { %3185 = vpow2.f32 %v2254_v46  ;;  %v2262_v56 = vmul.f32 1.442695, %v2249_v22 }
0x2c82   :  { %3187 = vpow2.f32 %v2256_v30 }
0x2c83   :  { %3189 = vpow2.f32 %v2258_v55 }
0x2c84   :  { %3191 = vpow2.f32 %v2260_v8 }
0x2c85   :  { %3193 = vpow2.f32 %v2262_v56 }
0x2c86   :  { %3195 = vpow2.f32 %v2264_v36 }
0x2c87   :  { %3197 = vpow2.f32 %v2266_v0 }
0x2c8d   :  { %v3904_v11 = vpop.eup %3183 }
0x2c8e   :  { %v3908_v7 = vpop.eup %3185  ;;  %2277 = vperm.xlu0 %3053, %v3904_v11  }
0x2c8f   :  { %2280 = vperm.xlu1 %3054, %v3908_v7   ;;  %v3912_v50 = vpop.eup %3187 }
0x2c90   :  { %v3915_v19 = vpop.eup %3189 }
0x2c91   :  { %v3192_v63 = vpop.eup %3191 }
0x2c92   :  { %v3194_v1 = vpop.eup %3193 }
0x2c93   :  { %2283 = vperm.xlu1 %3054, %v3912_v50   ;;  %v3918_v16 = vpop.eup %3195 }
0x2c94   :  { %v3921_v25 = vpop.eup %3197 }
0x2c97   :  { %2286 = vperm.xlu1 %3054, %v3915_v19  }
0x2c9b   :  { %2289 = vperm.xlu1 %3054, %v3192_v63  }
0x2c9f   :  { %2292 = vperm.xlu1 %3054, %v3194_v1  }
0x2ca3   :  { %2295 = vperm.xlu1 %3054, %v3918_v16  }
0x2ca7   :  { %2298 = vperm.xlu1 %3054, %v3921_v25  }
0x2d09   :  { %v2278_v32 = vpop.permute.xlu0 %2277 }
0x2d0a   :  { %v2281_v29 = vpop.permute.xlu1 %2280  ;;  %v2303_v39 = vrot.slane %v2278_v32, %v3860_v57 }
0x2d0b   :  { %v2307_v37 = vrot.slane %v2281_v29, %v3860_v57 }
0x2d0d   :  { %v2332_v20 = vsel %vm2184_vm10, %v2307_v37, %v2303_v39 }
0x2d0e   :  { %v2284_v6 = vpop.permute.xlu1 %2283 }
0x2d0f   :  { %v2311_v3 = vrot.slane %v2284_v6, %v3860_v57 }
0x2d11   :  { %v2333_v24 = vsel %vm2186_vm11, %v2311_v3, %v2332_v20 }
0x2d12   :  { %v2287_v10 = vpop.permute.xlu1 %2286 }
0x2d13   :  { %v2315_v40 = vrot.slane %v2287_v10, %v3860_v57 }
0x2d15   :  { %v2334_v30 = vsel %vm2188_vm12, %v2315_v40, %v2333_v24  ;;  %v2569_v40 = vld [vmem:[%s4069_s8 + $0x20] sm:$0xff] }
0x2d16   :  { %v2290_v26 = vpop.permute.xlu1 %2289 }
0x2d17   :  { %v2319_v49 = vrot.slane %v2290_v26, %v3860_v57 }
0x2d19   :  { %v2335_v41 = vsel %vm2190_vm13, %v2319_v49, %v2334_v30 }
0x2d1a   :  { %v2293_v33 = vpop.permute.xlu1 %2292 }
0x2d1b   :  { %v2323_v46 = vrot.slane %v2293_v33, %v3860_v57 }
0x2d1d   :  { %v2336_v55 = vsel %vm2192_vm14, %v2323_v46, %v2335_v41 }
0x2d1e   :  { %v2296_v44 = vpop.permute.xlu1 %2295 }
0x2d1f   :  { %v2327_v53 = vrot.slane %v2296_v44, %v3860_v57 }
0x2d21   :  { %v2337_v22 = vsel %vm2194_vm15, %v2327_v53, %v2336_v55 }
0x2d22   :  { %v2299_v47 = vpop.permute.xlu1 %2298 }
0x2d23   :  { %v2331_v61 = vrot.slane %v2299_v47, %v3860_v57 }
0x2d25   :  { %v2338_v8 = vsel %vm2196_vm0, %v2331_v61, %v2337_v22 }
0x2d26   :  { %v2340_v62 = vsel %vm2199_vm1, %v2338_v8, 0.0 }
0x2d27   :  { %2341 = vadd.xlane.f32.xlu1 %v2340_v62 }
0x2d38   :  { %2549 = vrot.lane.b32.xlu1 %v3788_v13, %s3246_s7 }
0x2db0   :  { %v2342_v9 = vpop.xlane.xlu1 %2341 }
0x2db1   :  { %v2363_v56 = vrot.slane %v2342_v9, %v2222_v42  ;;  %v2347_v36 = vrot.slane %v2342_v9, %v2206_v21  ;;  %v2367_v0 = vrot.slane %v2342_v9, %v2226_v48  ;;  %v2351_v29 = vrot.slane %v2342_v9, %v2210_v23 }
0x2db2   :  { %v2371_v42 = vrot.slane %v2342_v9, %v2230_v54  ;;  %v2355_v21 = vrot.slane %v2342_v9, %v2214_v28  ;;  %v2375_v48 = vrot.slane %v2342_v9, %v2234_v60  ;;  %v2359_v54 = vrot.slane %v2342_v9, %v2218_v31 }
0x2db3   :  { %3199 = vrcp.f32 %v2363_v56 }
0x2db4   :  { %v2550_v58 = vpop.permute.xlu1 %2549  ;;  %3201 = vrcp.f32 %v2347_v36 }
0x2db5   :  { %2552 = vst.msk [vmem:[#allocation2 - $0x6] sm:$0x80] %vm2539_vm2, %v2550_v58  ;;  %3203 = vrcp.f32 %v2367_v0 }
0x2db6   :  { %2553 = vst.msk [vmem:[#allocation2 - $0x5] sm:$0x40] %vm2541_vm3, %v2550_v58  ;;  %3205 = vrcp.f32 %v2351_v29 }
0x2db7   :  { %3207 = vrcp.f32 %v2371_v42 }
0x2db8   :  { %3209 = vrcp.f32 %v2355_v21 }
0x2db9   :  { %3211 = vrcp.f32 %v2375_v48 }
0x2dba   :  { %3213 = vrcp.f32 %v2359_v54 }
0x2dc0   :  { %v3200_v6 = vpop.eup %3199 }
0x2dc1   :  { %v2393_v10 = vmul.f32 %v3200_v6, %v3192_v63  ;;  %v3202_v26 = vpop.eup %3201 }
0x2dc2   :  { %v2385_v32 = vmul.f32 %v3202_v26, %v3904_v11  ;;  %v3204_v23 = vpop.eup %3203 }
0x2dc3   :  { %2421 = vperm.xlu0 %3053, %v2393_v10   ;;  %v2395_v33 = vmul.f32 %v3204_v23, %v3194_v1  ;;  %v3206_v37 = vpop.eup %3205 }
0x2dc4   :  { %v2387_v28 = vmul.f32 %v3206_v37, %v3908_v7  ;;  %v3208_v63 = vpop.eup %3207  ;;  %v2576_v7 = vld [vmem:[%s4069_s8 + $0x58] sm:$0xff] }
0x2dc5   :  { %v2397_v39 = vmul.f32 %v3208_v63, %v3918_v16  ;;  %v3210_v60 = vpop.eup %3209  ;;  %3020 = vmatpush3.msra.mxu0 %v2576_v7  ;;  %v2572_v16 = vld [vmem:[%s4069_s8 + $0x38] sm:$0xff] }
0x2dc6   :  { %v2389_v11 = vmul.f32 %v3210_v60, %v3912_v50  ;;  %v3212_v3 = vpop.eup %3211  ;;  %v2575_v50 = vld [vmem:[%s4069_s8 + $0x50] sm:$0xff]  ;;  %3021 = vmatprep.subr.mxu0 %v3241_v2 }
0x2dc7   :  { %2409 = vperm.xlu0 %3053, %v2385_v32   ;;  %v2399_v14 = vmul.f32 %v3212_v3, %v3921_v25  ;;  %v3214_v31 = vpop.eup %3213  ;;  %3022 = vmatpush3.msra.mxu0 %v2575_v50  ;;  %v2570_v25 = vld [vmem:[%s4069_s8 + $0x28] sm:$0xff] }
0x2dc8   :  { %v2391_v1 = vmul.f32 %v3214_v31, %v3915_v19  ;;  %v2574_v19 = vld [vmem:[%s4069_s8 + $0x48] sm:$0xff]  ;;  %3023 = vmatprep.subr.mxu0 %v3241_v2 }
0x2dc9   :  { %3024 = vmatpush3.msra.mxu0 %v2574_v19 }
0x2dca   :  { %3025 = vmatprep.subr.mxu0 %v3241_v2 }
0x2dcb   :  { %2424 = vperm.xlu0 %3053, %v2395_v33  }
0x2dcf   :  { %2412 = vperm.xlu0 %3053, %v2387_v28  }
0x2dd3   :  { %2427 = vperm.xlu0 %3053, %v2397_v39  }
0x2dd7   :  { %2415 = vperm.xlu0 %3053, %v2389_v11  }
0x2ddb   :  { %2430 = vperm.xlu0 %3053, %v2399_v14  }
0x2ddf   :  { %2418 = vperm.xlu0 %3053, %v2391_v1  }
0x2de3   :  { %2536 = vrot.lane.b32.xlu0 %v3581_v27, %s3246_s7 }
0x2de7   :  { %2543 = vrot.lane.b32.xlu0 %v3581_v27, %s3243_s3  ;;  %v2573_v27 = vld [vmem:[%s4069_s8 + $0x40] sm:$0xff] }
0x2de8   :  { %3026 = vmatpush3.msra.mxu0 %v2573_v27 }
0x2de9   :  { %3027 = vmatprep.subr.mxu0 %v3241_v2 }
0x2dea   :  { %3028 = vmatpush3.msra.mxu0 %v2572_v16 }
0x2deb   :  { %2554 = vrot.lane.b32.xlu0 %v3788_v13, %s3243_s3  ;;  %v2571_v13 = vld [vmem:[%s4069_s8 + $0x30] sm:$0xff]  ;;  %3029 = vmatprep.subr.mxu0 %v3241_v2 }
0x2dec   :  { %3030 = vmatpush3.msra.mxu0 %v2571_v13 }
0x2ded   :  { %3031 = vmatprep.subr.mxu0 %v3241_v2 }
0x2dee   :  { %3032 = vmatpush3.msra.mxu0 %v2570_v25 }
0x2def   :  { %3033 = vmatprep.subr.mxu0 %v3241_v2 }
0x2df0   :  { %3034 = vmatpush3.msra.mxu0 %v2569_v40 }
0x2df1   :  { %3035 = vmatprep.subr.mxu0 %v3241_v2 }
0x2df2   :  { %3036 = vmatpush3.msra.mxu0 %v2568_v59 }
0x2df3   :  { %3037 = vmatprep.subr.mxu0 %v3241_v2 }
0x2e3e   :  { %v2422_v49 = vpop.permute.xlu0 %2421 }
0x2e3f   :  { %v2502_v20 = vmul.f32 %v2422_v49, %v3822_v34  ;;  %v2451_v63 = vrot.slane %v2422_v49, %v3860_v57  ;;  %v2722_v49 = vld [vmem:[%s4070_s9] ss:$0 sm:$0xff] }
0x2e41   :  { %v2505_v24 = vrot.slane %v2502_v20, 1 }
0x2e42   :  { %v2410_v44 = vpop.permute.xlu0 %2409 }
0x2e43   :  { %v2474_v53 = vmul.f32 %v2410_v44, %v3841_v45  ;;  %v2507_v47 = vadd.f32 %v2505_v24, %v2502_v20  ;;  %v2435_v10 = vrot.slane %v2410_v44, %v3860_v57 }
0x2e45   :  { %v2477_v55 = vrot.slane %v2474_v53, 1 }
0x2e46   :  { %v2425_v46 = vpop.permute.xlu0 %2424 }
0x2e47   :  { %v2509_v30 = vmul.f32 %v2425_v46, %v2096_v43  ;;  %v2479_v9 = vadd.f32 %v2477_v55, %v2474_v53  ;;  %v2455_v60 = vrot.slane %v2425_v46, %v3860_v57 }
0x2e49   :  { %v2510_v61 = vadd.f32 %v2509_v30, %v2507_v47  ;;  %v2512_v22 = vrot.slane %v2509_v30, 1 }
0x2e4a   :  { %v2413_v41 = vpop.permute.xlu0 %2412 }
0x2e4b   :  { %v2481_v8 = vmul.f32 %v2413_v41, %v2087_v15  ;;  %v2514_v36 = vadd.f32 %v2512_v22, %v2510_v61  ;;  %v2567_v15 = vld [vmem:[%s4069_s8 + $0x10] sm:$0xff]  ;;  %v2439_v4 = vrot.slane %v2413_v41, %v3860_v57 }
0x2e4c   :  { %3038 = vmatpush3.msra.mxu0 %v2567_v15 }
0x2e4d   :  { %v2482_v56 = vadd.f32 %v2481_v8, %v2479_v9  ;;  %v2484_v58 = vrot.slane %v2481_v8, 1  ;;  %3039 = vmatprep.subr.mxu0 %v3241_v2 }
0x2e4e   :  { %v2428_v62 = vpop.permute.xlu0 %2427 }
0x2e4f   :  { %v2516_v34 = vmul.f32 %v2428_v62, %v2099_v35  ;;  %v2486_v29 = vadd.f32 %v2484_v58, %v2482_v56  ;;  %v2459_v31 = vrot.slane %v2428_v62, %v3860_v57 }
0x2e51   :  { %v2517_v0 = vadd.f32 %v2516_v34, %v2514_v36  ;;  %v2519_v38 = vrot.slane %v2516_v34, 1 }
0x2e52   :  { %v2416_v45 = vpop.permute.xlu0 %2415 }
0x2e53   :  { %v2488_v43 = vmul.f32 %v2416_v45, %v2090_v5  ;;  %v2521_v21 = vadd.f32 %v2519_v38, %v2517_v0  ;;  %v2566_v5 = vld [vmem:[%s4069_s8 + $0x8] sm:$0xff]  ;;  %v2443_v26 = vrot.slane %v2416_v45, %v3860_v57 }
0x2e54   :  { %3040 = vmatpush3.msra.mxu0 %v2566_v5 }
0x2e55   :  { %v2489_v42 = vadd.f32 %v2488_v43, %v2486_v29  ;;  %v2491_v6 = vrot.slane %v2488_v43, 1  ;;  %3041 = vmatprep.subr.mxu0 %v3241_v2 }
0x2e56   :  { %v2431_v35 = vpop.permute.xlu0 %2430  ;;  %3042 = vmatpush3.msra.mxu0 %v2565_v51 }
0x2e57   :  { %v2523_v12 = vmul.f32 %v2431_v35, %v2102_v52  ;;  %v2464_v52 = vsel %vm2184_vm10, %v2439_v4, %v2435_v10  ;;  %v2493_v33 = vadd.f32 %v2491_v6, %v2489_v42  ;;  %v2463_v17 = vrot.slane %v2431_v35, %v3860_v57 }
0x2e58   :  { %v2465_v39 = vsel %vm2186_vm11, %v2443_v26, %v2464_v52 }
0x2e59   :  { %v2524_v48 = vadd.f32 %v2523_v12, %v2521_v21  ;;  %v2526_v32 = vrot.slane %v2523_v12, 1 }
0x2e5a   :  { %v2419_v23 = vpop.permute.xlu0 %2418 }
0x2e5b   :  { %v2528_v54 = vadd.f32 %v2526_v32, %v2524_v48  ;;  %v2447_v37 = vrot.slane %v2419_v23, %v3860_v57  ;;  %v2495_v28 = vmul.f32 %v2419_v23, %v2093_v18 }
0x2e5d   :  { %v2466_v11 = vsel %vm2188_vm12, %v2447_v37, %v2465_v39  ;;  %v2496_v3 = vadd.f32 %v2495_v28, %v2493_v33  ;;  %v2498_v14 = vrot.slane %v2495_v28, 1  ;;  %v2530_v2 = vrot.slane %v2528_v54, 7 }
0x2e5e   :  { %v2467_v1 = vsel %vm2190_vm13, %v2451_v63, %v2466_v11  ;;  %v2537_v7 = vpop.permute.xlu0 %2536 }
0x2e5f   :  { %v2468_v18 = vsel %vm2192_vm14, %v2455_v60, %v2467_v1  ;;  %v2500_v50 = vadd.f32 %v2498_v14, %v2496_v3  ;;  %2540 = vst.msk [vmem:[#allocation2 - $0x7] sm:$0x80] %vm2539_vm2, %v2537_v7 }
0x2e60   :  { %v2469_v19 = vsel %vm2194_vm15, %v2459_v31, %v2468_v18  ;;  %2542 = vst.msk [vmem:[#allocation2 - $0x6] sm:$0x40] %vm2541_vm3, %v2537_v7 }
0x2e61   :  { %v2470_v27 = vsel %vm2196_vm0, %v2463_v17, %v2469_v19  ;;  %v2533_v16 = vsel %vm2532_vm4, %v2500_v50, %v2530_v2 }
0x2e62   :  { %2472 = vst.msk [vmem:[%s4072_s11] sm:$0xff] %vm2199_vm1, %v2470_v27  ;;  %2559 = vrot.lane.b32.xlu0 %v2533_v16, %s3243_s3  ;;  %v2544_v57 = vpop.permute.xlu0 %2543  ;;  %s3247_s11 = smov [#allocation3]  }
0x2e63   :  { %2547 = vst.msk [vmem:[#allocation2 - $0x7] sm:$0x80] %vm2546_vm5, %v2544_v57  ;;  %s2672_s3 = sshll.u32 %s3247_s11, 4  ;;  %s2673_s3 = int_to_ptr.vmem [resolvable:$true] %s2672_s3 }
0x2e64   :  { %s3219_s28 = scalar_lea.vmem %s2673_s3, 32  ;;  %p3224_p1 = scmp.lt.s32.totalorder %s2673_s3, %s2673_s3 }
0x2e65   :  { %p3220_p0 = scmp.ne.s32.totalorder %s2673_s3, %s3219_s28  ;;  %p3225_p2 = scmp.lt.s32.totalorder %s3219_s28, %s3219_s28 }
0x2e66   :  { %v2555_v13 = vpop.permute.xlu0 %2554 }
0x2e67   :  { %2557 = vst.msk [vmem:[#allocation2 - $0x6] sm:$0x80] %vm2546_vm5, %v2555_v13  ;;  %p3226_p3 = por %p3225_p2, %p3224_p1 }
0x2e69   :  { %p3227_p4 = pnand %p3226_p3, %p3220_p0 }
0x2ed4   :  { %v2560_v25 = vpop.permute.xlu0 %2559 }
0x2ed5   :  { %2563 = vst.msk [vmem:[#allocation2] sm:$0x3] %vm2562_vm6, %v2560_v25 }
0x2edc   :  { %v2564_v40 = vld [vmem:[#allocation2] sm:$0x3] }
0x2edd   :  { %3044 = vmatmul.mubr.msk.f32.vlgmr.msra.gmra.mxu0 %vm2584_vm7, %v2564_v40 }
0x2f9d   :  { %v2654_v44 = vpop.f32.mrf.mxu0 }
0x2f9e   :  { %v2655_v20 = vadd.f32 %v2722_v49, %v2654_v44 }
0x2f9f   :  { %v3045_v46 = vpop.f32.mrf.mxu0 }
0x2fa0   :  { %v2724_v24 = vmul.f32 -1.442695, %v2655_v20 }
0x2fa2   :  { %3215 = vpow2.f32 %v2724_v24 }
0x2faf   :  { %v3216_v53 = vpop.eup %3215 }
0x2fb0   :  { %v2661_v30 = vadd.f32 1.0, %v3216_v53 }
0x2fb2   :  { %3217 = vrcp.f32 %v2661_v30 }
0x2fbf   :  { %v3218_v41 = vpop.eup %3217 }
0x2fc0   :  { %2665 = vst.msk [vmem:[#allocation3] sm:$0x3] %vm2664_vm8, %v3218_v41 }
0x2fc1   :  { %3230 = shalt.err (!%p3227_p4)
}
0x2fc2   :  { %2675 = dma.vmem_to_hbm [thread:$0]  %s2673_s3, 32, %s4071_s10, [#allocation4]  }
0x2fc3   :  { %3239 = dma.done.wait [#allocation4], 32  }
0x2fc4   :  { %3240 = vsyncadd [#allocation4], 4294967264 }
0x2fc5   :  { %2683 = vsyncpa [#allocation4], 1 }

</bundles_post_ra>
